<compile_context>
chip_gen: v7x
topology: tpu7x:2x2x1
jax: 0.10.0
libtpu: 0.0.40
codegen_flags: <defaults>
</compile_context>

<pallas_src>
import math
import functools

import jax
import jax.numpy as jnp
from jax.experimental import pallas as pl
from jax.experimental.pallas import tpu as pltpu


def _attention_kernel(q_ref, k_ref, v_ref,
                      wq_ref, wk_ref, wv_ref,
                      wf_res_ref, wf_ctx_ref, bf_ref, gamma_ref, beta_ref,
                      out_ref, attn_ref,
                      *, num_heads, head_dim, matmul_dtype, eps):
    f32 = jnp.float32
    bt, sq, hidden = q_ref.shape
    sk = k_ref.shape[1]
    mdt = matmul_dtype

    def mm(x, w):
        # x: (rows, c), w: (out, c)  ->  x @ w.T on the MXU, f32 accumulation.
        # dot_general with a transposed contracting dim: no explicit transpose.
        return jax.lax.dot_general(
            x.astype(mdt), w.astype(mdt),
            dimension_numbers=(((1,), (1,)), ((), ())),
            preferred_element_type=f32)

    residual = q_ref[...].astype(f32).reshape(bt * sq, hidden)

    # Projections (1/sqrt(d_k) already folded into Wq on the host).
    qp = mm(residual, wq_ref[...]).reshape(bt, sq, hidden)
    kp = mm(k_ref[...].reshape(bt * sk, hidden), wk_ref[...]).reshape(bt, sk, hidden)
    vp = mm(v_ref[...].reshape(bt * sk, hidden), wv_ref[...]).reshape(bt, sk, hidden)

    ctx_heads = []
    for hd in range(num_heads):
        lo = hd * head_dim
        q_h = qp[:, :, lo:lo + head_dim]        # (bt, sq, dk)
        k_h = kp[:, :, lo:lo + head_dim]        # (bt, sk, dk)
        v_h = vp[:, :, lo:lo + head_dim]        # (bt, sk, dk)

        # scores = q_h k_h^T (scale pre-folded into Wq); f32 accumulation.
        s = jnp.einsum('bqd,bkd->bqk', q_h.astype(mdt), k_h.astype(mdt),
                       preferred_element_type=f32)             # (bt, sq, sk)

        # Numerically stable softmax; exact reciprocal of the (bt,sq,1) row
        # sums so the stored attention rows sum to 1 (matches torch.softmax).
        m = jnp.max(s, axis=-1, keepdims=True)
        e = jnp.exp(s - m)
        inv = pl.reciprocal(jnp.sum(e, axis=-1, keepdims=True))
        attn = e * inv

        attn_ref[hd] = attn.astype(attn_ref.dtype)

        # attention-weighted values (per-head context, concatenated later).
        ctx_heads.append(jnp.einsum('bqk,bkd->bqd', attn.astype(mdt),
                                    v_h.astype(mdt),
                                    preferred_element_type=f32))

    # Lane-concat of per-head contexts == torch's (B, Sq, h*dk) concat layout.
    ctx_full = jnp.concatenate(ctx_heads, axis=-1).reshape(bt * sq, hidden)

    # final_linear over torch.cat([residual, ctx]) as two K=hidden matmuls.
    out = (mm(residual, wf_res_ref[...])
           + mm(ctx_full, wf_ctx_ref[...])
           + bf_ref[...].astype(f32))

    # residual_dropout is identity in eval mode; residual add + LayerNorm.
    out = out + residual
    mu = jnp.mean(out, axis=-1, keepdims=True)
    var = jnp.mean(jnp.square(out - mu), axis=-1, keepdims=True)
    y = (out - mu) * jax.lax.rsqrt(var + eps)
    y = y * gamma_ref[...].astype(f32) + beta_ref[...].astype(f32)
    out_ref[...] = y.reshape(bt, sq, hidden).astype(out_ref.dtype)


def _step_vmem_bytes(bt, sq, sk, hidden, num_heads):
    """Rough per-grid-step VMEM estimate (f32-conservative)."""
    f32 = 4
    io = 2 * f32 * (2 * bt * sq * hidden + 2 * bt * sk * hidden)   # q/out + k/v, double-buffered
    attn_out = 2 * f32 * num_heads * bt * sq * sk                  # attn block, double-buffered
    weights = f32 * (5 * hidden * hidden + 3 * hidden)             # single-buffered (Buffered(1))
    live = f32 * (4 * bt * sq * hidden + 2 * bt * sk * hidden      # residual/qp/ctx/out + kp/vp
                  + 3 * bt * sq * sk)                              # s / e / attn temporaries
    return io + attn_out + weights + 2 * live                      # 2x margin for compiler temps


def _pick_batch_tile(batch, sq, sk, hidden, num_heads,
                     vmem_budget_bytes=24 << 20, target_rows=256):
    """Largest batch tile that fits the VMEM budget, preferring >=4 grid steps
    (>=2 per v7x TensorCore) and an MXU M dimension (bt*sq) near `target_rows`."""
    divisors = [d for d in range(1, batch + 1) if batch % d == 0]
    feasible = [d for d in divisors
                if _step_vmem_bytes(d, sq, sk, hidden, num_heads) <= vmem_budget_bytes]
    if not feasible:
        feasible = [1]

    def score(bt):
        steps = batch // bt
        rows = bt * sq
        return (steps >= 4, steps >= 2, -abs(rows - target_rows), bt)

    return max(feasible, key=score)


def attention_forward(params, key, value, query, *, num_heads,
                      matmul_dtype=None, attn_dtype=None):
    """Pallas equivalent of Attention.forward(key, value, query) (eval mode)."""
    B, sq, hidden = query.shape
    _, sk, _ = key.shape
    assert key.shape == (B, sk, hidden) and value.shape == (B, sk, hidden)
    assert hidden % num_heads == 0
    head_dim = hidden // num_heads
    scale = 1.0 / math.sqrt(head_dim)
    if matmul_dtype is None:
        matmul_dtype = jnp.bfloat16       # MXU-native operands, f32 accumulation
    if attn_dtype is None:
        attn_dtype = query.dtype          # pass bf16 on v5e to halve attn HBM stream

    # Fold 1/sqrt(d_k) into Wq once on the host (query Linear has no bias).
    wq_scaled = params["wq"] * scale
    # Split final_linear weight along its input dim: first H columns act on the
    # residual, last H columns on the attention context.
    wf = params["wf"]
    wf_res = wf[:, :hidden]
    wf_ctx = wf[:, hidden:]
    bf2 = params["bf"].reshape(1, hidden)
    gamma2 = params["gamma"].reshape(1, hidden)
    beta2 = params["beta"].reshape(1, hidden)

    bt = _pick_batch_tile(B, sq, sk, hidden, num_heads)
    grid = (B // bt,)
    vmem_limit = int(min(96 << 20,
                         max(32 << 20,
                             2 * _step_vmem_bytes(bt, sq, sk, hidden, num_heads))))

    kernel = functools.partial(
        _attention_kernel, num_heads=num_heads, head_dim=head_dim,
        matmul_dtype=matmul_dtype, eps=1e-5)

    out_shapes = (
        jax.ShapeDtypeStruct((B, sq, hidden), query.dtype),          # result
        jax.ShapeDtypeStruct((num_heads, B, sq, sk), attn_dtype),    # attn
    )

    def wspec(shape):
        # Constant block index -> DMA'd once, VMEM-resident; single-buffered.
        nd = len(shape)
        return pl.BlockSpec(shape, lambda g, _nd=nd: (0,) * _nd,
                            pipeline_mode=pl.Buffered(1))

    result, attn = pl.pallas_call(
        kernel,
        out_shape=out_shapes,
        grid_spec=pltpu.PrefetchScalarGridSpec(
            num_scalar_prefetch=0,
            grid=grid,
            in_specs=[
                pl.BlockSpec((bt, sq, hidden), lambda g: (g, 0, 0)),   # query
                pl.BlockSpec((bt, sk, hidden), lambda g: (g, 0, 0)),   # key
                pl.BlockSpec((bt, sk, hidden), lambda g: (g, 0, 0)),   # value
                wspec((hidden, hidden)),    # Wq (pre-scaled)
                wspec((hidden, hidden)),    # Wk
                wspec((hidden, hidden)),    # Wv
                wspec((hidden, hidden)),    # Wf[:, :H]
                wspec((hidden, hidden)),    # Wf[:, H:]
                wspec((1, hidden)),         # final bias
                wspec((1, hidden)),         # layernorm gamma
                wspec((1, hidden)),         # layernorm beta
            ],
            out_specs=[
                pl.BlockSpec((bt, sq, hidden), lambda g: (g, 0, 0)),
                pl.BlockSpec((num_heads, bt, sq, sk), lambda g: (0, g, 0, 0)),
            ],
        ),
        compiler_params=pltpu.CompilerParams(
            dimension_semantics=("parallel",),
            vmem_limit_bytes=vmem_limit),
    )(query, key, value,
      wq_scaled, params["wk"], params["wv"],
      wf_res, wf_ctx, bf2, gamma2, beta2)

    # [h, B, Sq, Sk] -> [h*B, Sq, Sk] : matches torch's permute(2,0,1,3).view(-1,...)
    attns = attn.reshape(num_heads * B, sq, sk)
    return result, attns


def init_params(rng, num_hidden):
    kq, kk, kv, kf, kb = jax.random.split(rng, 5)

    def xavier(k, out_dim, in_dim):
        bound = math.sqrt(6.0 / (in_dim + out_dim))
        return jax.random.uniform(k, (out_dim, in_dim), jnp.float32, -bound, bound)

    bias_bound = 1.0 / math.sqrt(2 * num_hidden)
    return {
        "wq": xavier(kq, num_hidden, num_hidden),
        "wk": xavier(kk, num_hidden, num_hidden),
        "wv": xavier(kv, num_hidden, num_hidden),
        "wf": xavier(kf, num_hidden, 2 * num_hidden),
        "bf": jax.random.uniform(kb, (num_hidden,), jnp.float32,
                                 -bias_bound, bias_bound),
        "gamma": jnp.ones((num_hidden,), jnp.float32),
        "beta": jnp.zeros((num_hidden,), jnp.float32),
    }


def _reference(params, key, value, query, num_heads):
    """Pure-JAX replica of the PyTorch Attention.forward (eval mode)."""
    B, sq, hidden = query.shape
    sk = key.shape[1]
    dk = hidden // num_heads
    residual = query
    kp = jnp.einsum('bsh,oh->bso', key, params["wk"])
    vp = jnp.einsum('bsh,oh->bso', value, params["wv"])
    qp = jnp.einsum('bsh,oh->bso', query, params["wq"])

    def split_heads(x, s):
        return x.reshape(B, s, num_heads, dk).transpose(2, 0, 1, 3).reshape(
            num_heads * B, s, dk)

    kp, vp, qp = split_heads(kp, sk), split_heads(vp, sk), split_heads(qp, sq)
    attn = jnp.einsum('bqd,bkd->bqk', qp, kp) / math.sqrt(dk)
    attn = jax.nn.softmax(attn, axis=-1)
    result = jnp.einsum('bqk,bkd->bqd', attn, vp)
    result = result.reshape(num_heads, B, sq, dk).transpose(1, 2, 0, 3).reshape(
        B, sq, hidden)
    result = jnp.concatenate([residual, result], axis=-1)
    result = jnp.einsum('bsh,oh->bso', result, params["wf"]) + params["bf"]
    result = result + residual
    mu = result.mean(-1, keepdims=True)
    var = jnp.mean(jnp.square(result - mu), -1, keepdims=True)
    result = (result - mu) / jnp.sqrt(var + 1e-5) * params["gamma"] + params["beta"]
    return result, attn


if __name__ == "__main__":
    B, seq, num_hidden, h = 2, 8, 32, 4

    rng = jax.random.PRNGKey(0)
    r_params, r_k, r_v, r_q = jax.random.split(rng, 4)
    params = init_params(r_params, num_hidden)
    key = jax.random.normal(r_k, (B, seq, num_hidden), jnp.float32)
    value = jax.random.normal(r_v, (B, seq, num_hidden), jnp.float32)
    query = jax.random.normal(r_q, (B, seq, num_hidden), jnp.float32)

    ref_result, ref_attns = _reference(params, key, value, query, h)

    # Default path: bf16 MXU operands, f32 accumulation (v5e/v6e/v7x fast path).
    result, attns = attention_forward(params, key, value, query, num_heads=h)
    jax.block_until_ready((result, attns))
    assert result.shape == (B, seq, num_hidden)
    assert attns.shape == (h * B, seq, seq)
    assert jnp.allclose(result, ref_result, atol=1e-1, rtol=1e-1), \
        float(jnp.max(jnp.abs(result - ref_result)))
    assert jnp.allclose(attns, ref_attns, atol=1e-1, rtol=1e-1), \
        float(jnp.max(jnp.abs(attns - ref_attns)))

    # Full-f32 operands: tight agreement with the reference.
    result_f32, attns_f32 = attention_forward(
        params, key, value, query, num_heads=h, matmul_dtype=jnp.float32)
    jax.block_until_ready((result_f32, attns_f32))
    assert jnp.allclose(result_f32, ref_result, atol=2e-2, rtol=2e-2), \
        float(jnp.max(jnp.abs(result_f32 - ref_result)))
    assert jnp.allclose(attns_f32, ref_attns, atol=2e-2, rtol=2e-2), \
        float(jnp.max(jnp.abs(attns_f32 - ref_attns)))

    print("KERNEL_OK")
</pallas_src>

<mosaic_0001>
module attributes {stable_mosaic.version = 11 : i64} {
  func.func @_attention_kernel(%arg0: i32, %arg1: memref<1x8x32xf32, #tpu.memory_space<vmem>>, %arg2: memref<1x8x32xf32, #tpu.memory_space<vmem>>, %arg3: memref<1x8x32xf32, #tpu.memory_space<vmem>>, %arg4: memref<32x32xf32, #tpu.memory_space<vmem>>, %arg5: memref<32x32xf32, #tpu.memory_space<vmem>>, %arg6: memref<32x32xf32, #tpu.memory_space<vmem>>, %arg7: memref<32x32xf32, #tpu.memory_space<vmem>>, %arg8: memref<32x32xf32, #tpu.memory_space<vmem>>, %arg9: memref<1x32xf32, #tpu.memory_space<vmem>>, %arg10: memref<1x32xf32, #tpu.memory_space<vmem>>, %arg11: memref<1x32xf32, #tpu.memory_space<vmem>>, %arg12: memref<1x8x32xf32, #tpu.memory_space<vmem>>, %arg13: memref<4x1x8x8xf32, #tpu.memory_space<vmem>>) attributes {dimension_semantics = [#tpu.dimension_semantics<parallel>], iteration_bounds = array<i64: 2>, scalar_prefetch = 0 : i64, scratch_operands = 0 : i64, tpu.core_type = #tpu.core_type<tc>, window_params = [{transform_indices = @transform_0, window_bounds = array<i64: 1, 8, 32>}, {transform_indices = @transform_1, window_bounds = array<i64: 1, 8, 32>}, {transform_indices = @transform_2, window_bounds = array<i64: 1, 8, 32>}, {pipeline_mode = #tpu.pipeline_mode<synchronous>, transform_indices = @transform_3, window_bounds = array<i64: 32, 32>}, {pipeline_mode = #tpu.pipeline_mode<synchronous>, transform_indices = @transform_4, window_bounds = array<i64: 32, 32>}, {pipeline_mode = #tpu.pipeline_mode<synchronous>, transform_indices = @transform_5, window_bounds = array<i64: 32, 32>}, {pipeline_mode = #tpu.pipeline_mode<synchronous>, transform_indices = @transform_6, window_bounds = array<i64: 32, 32>}, {pipeline_mode = #tpu.pipeline_mode<synchronous>, transform_indices = @transform_7, window_bounds = array<i64: 32, 32>}, {pipeline_mode = #tpu.pipeline_mode<synchronous>, transform_indices = @transform_8, window_bounds = array<i64: 1, 32>}, {pipeline_mode = #tpu.pipeline_mode<synchronous>, transform_indices = @transform_9, window_bounds = array<i64: 1, 32>}, {pipeline_mode = #tpu.pipeline_mode<synchronous>, transform_indices = @transform_10, window_bounds = array<i64: 1, 32>}, {transform_indices = @transform_11, window_bounds = array<i64: 1, 8, 32>}, {transform_indices = @transform_12, window_bounds = array<i64: 4, 1, 8, 8>}]} {
    %c0 = arith.constant 0 : index
    %c0_0 = arith.constant 0 : index
    %c0_1 = arith.constant 0 : index
    %0 = vector.load %arg1[%c0, %c0_0, %c0_1] : memref<1x8x32xf32, #tpu.memory_space<vmem>>, vector<1x8x32xf32>
    %1 = vector.shape_cast %0 : vector<1x8x32xf32> to vector<8x32xf32>
    %c0_2 = arith.constant 0 : index
    %c0_3 = arith.constant 0 : index
    %2 = vector.load %arg4[%c0_2, %c0_3] : memref<32x32xf32, #tpu.memory_space<vmem>>, vector<32x32xf32>
    %3 = arith.truncf %1 : vector<8x32xf32> to vector<8x32xbf16>
    %4 = arith.truncf %2 : vector<32x32xf32> to vector<32x32xbf16>
    %cst = arith.constant dense<0.000000e+00> : vector<8x32xf32>
    %5 = tpu.matmul %3, %4, %cst {dimension_numbers = #tpu.dot_dimension_numbers<[1], [1], [0], [0], [0, 0, 1, 0], [], []>} : vector<8x32xbf16>, vector<32x32xbf16>, vector<8x32xf32> -> vector<8x32xf32>
    %6 = vector.shape_cast %5 : vector<8x32xf32> to vector<1x8x32xf32>
    %c0_4 = arith.constant 0 : index
    %c0_5 = arith.constant 0 : index
    %c0_6 = arith.constant 0 : index
    %7 = vector.load %arg2[%c0_4, %c0_5, %c0_6] : memref<1x8x32xf32, #tpu.memory_space<vmem>>, vector<1x8x32xf32>
    %8 = vector.shape_cast %7 : vector<1x8x32xf32> to vector<8x32xf32>
    %c0_7 = arith.constant 0 : index
    %c0_8 = arith.constant 0 : index
    %9 = vector.load %arg5[%c0_7, %c0_8] : memref<32x32xf32, #tpu.memory_space<vmem>>, vector<32x32xf32>
    %10 = arith.truncf %8 : vector<8x32xf32> to vector<8x32xbf16>
    %11 = arith.truncf %9 : vector<32x32xf32> to vector<32x32xbf16>
    %cst_9 = arith.constant dense<0.000000e+00> : vector<8x32xf32>
    %12 = tpu.matmul %10, %11, %cst_9 {dimension_numbers = #tpu.dot_dimension_numbers<[1], [1], [0], [0], [0, 0, 1, 0], [], []>} : vector<8x32xbf16>, vector<32x32xbf16>, vector<8x32xf32> -> vector<8x32xf32>
    %13 = vector.shape_cast %12 : vector<8x32xf32> to vector<1x8x32xf32>
    %c0_10 = arith.constant 0 : index
    %c0_11 = arith.constant 0 : index
    %c0_12 = arith.constant 0 : index
    %14 = vector.load %arg3[%c0_10, %c0_11, %c0_12] : memref<1x8x32xf32, #tpu.memory_space<vmem>>, vector<1x8x32xf32>
    %15 = vector.shape_cast %14 : vector<1x8x32xf32> to vector<8x32xf32>
    %c0_13 = arith.constant 0 : index
    %c0_14 = arith.constant 0 : index
    %16 = vector.load %arg6[%c0_13, %c0_14] : memref<32x32xf32, #tpu.memory_space<vmem>>, vector<32x32xf32>
    %17 = arith.truncf %15 : vector<8x32xf32> to vector<8x32xbf16>
    %18 = arith.truncf %16 : vector<32x32xf32> to vector<32x32xbf16>
    %cst_15 = arith.constant dense<0.000000e+00> : vector<8x32xf32>
    %19 = tpu.matmul %17, %18, %cst_15 {dimension_numbers = #tpu.dot_dimension_numbers<[1], [1], [0], [0], [0, 0, 1, 0], [], []>} : vector<8x32xbf16>, vector<32x32xbf16>, vector<8x32xf32> -> vector<8x32xf32>
    %20 = vector.shape_cast %19 : vector<8x32xf32> to vector<1x8x32xf32>
    %21 = vector.extract_strided_slice %6 {offsets = [0, 0, 0], sizes = [1, 8, 8], strides = [1, 1, 1]} : vector<1x8x32xf32> to vector<1x8x8xf32>
    %22 = vector.extract_strided_slice %13 {offsets = [0, 0, 0], sizes = [1, 8, 8], strides = [1, 1, 1]} : vector<1x8x32xf32> to vector<1x8x8xf32>
    %23 = vector.extract_strided_slice %20 {offsets = [0, 0, 0], sizes = [1, 8, 8], strides = [1, 1, 1]} : vector<1x8x32xf32> to vector<1x8x8xf32>
    %24 = arith.truncf %21 : vector<1x8x8xf32> to vector<1x8x8xbf16>
    %25 = arith.truncf %22 : vector<1x8x8xf32> to vector<1x8x8xbf16>
    "tpu.trace_start"() <{level = 10 : i32, message = "bqd,bkd->bqk"}> : () -> ()
    %cst_16 = arith.constant dense<0.000000e+00> : vector<1x8x8xf32>
    %26 = tpu.matmul %24, %25, %cst_16 {dimension_numbers = #tpu.dot_dimension_numbers<[2], [2], [1], [1], [0, 0, 0, 1, 1, 1], [0], [0]>} : vector<1x8x8xbf16>, vector<1x8x8xbf16>, vector<1x8x8xf32> -> vector<1x8x8xf32>
    "tpu.trace_stop"() : () -> ()
    %cst_17 = arith.constant dense<0xFF800000> : vector<1x8xf32>
    %27 = vector.multi_reduction <maximumf>, %26, %cst_17 [2] : vector<1x8x8xf32> to vector<1x8xf32>
    %28 = vector.shape_cast %27 : vector<1x8xf32> to vector<1x8x1xf32>
    %29 = vector.broadcast %28 : vector<1x8x1xf32> to vector<1x8x8xf32>
    %30 = arith.subf %26, %29 : vector<1x8x8xf32>
    %31 = math.exp %30 : vector<1x8x8xf32>
    %cst_18 = arith.constant dense<0.000000e+00> : vector<1x8xf32>
    %32 = vector.multi_reduction <add>, %31, %cst_18 [2] : vector<1x8x8xf32> to vector<1x8xf32>
    %33 = vector.shape_cast %32 : vector<1x8xf32> to vector<1x8x1xf32>
    %34 = tpu.reciprocal %33 : vector<1x8x1xf32> -> vector<1x8x1xf32>
    %35 = vector.broadcast %34 : vector<1x8x1xf32> to vector<1x8x8xf32>
    %36 = arith.mulf %31, %35 : vector<1x8x8xf32>
    %c0_19 = arith.constant 0 : index
    %c0_20 = arith.constant 0 : index
    %c0_21 = arith.constant 0 : index
    %c0_22 = arith.constant 0 : index
    %37 = vector.load %arg13[%c0_19, %c0_20, %c0_21, %c0_22] : memref<4x1x8x8xf32, #tpu.memory_space<vmem>>, vector<1x1x8x8xf32>
    %38 = vector.shape_cast %37 : vector<1x1x8x8xf32> to vector<1x8x8xf32>
    %39 = vector.shape_cast %36 : vector<1x8x8xf32> to vector<1x1x8x8xf32>
    tpu.vector_store %arg13[%c0_19, %c0_20, %c0_21, %c0_22], %39 {strides = array<i32>} : memref<4x1x8x8xf32, #tpu.memory_space<vmem>>, vector<1x1x8x8xf32>,
    %40 = arith.truncf %36 : vector<1x8x8xf32> to vector<1x8x8xbf16>
    %41 = arith.truncf %23 : vector<1x8x8xf32> to vector<1x8x8xbf16>
    "tpu.trace_start"() <{level = 10 : i32, message = "bqk,bkd->bqd"}> : () -> ()
    %cst_23 = arith.constant dense<0.000000e+00> : vector<1x8x8xf32>
    %42 = tpu.matmul %40, %41, %cst_23 {dimension_numbers = #tpu.dot_dimension_numbers<[2], [1], [1], [2], [0, 0, 0, 1, 1, 2], [0], [0]>} : vector<1x8x8xbf16>, vector<1x8x8xbf16>, vector<1x8x8xf32> -> vector<1x8x8xf32>
    "tpu.trace_stop"() : () -> ()
    %43 = vector.extract_strided_slice %6 {offsets = [0, 0, 8], sizes = [1, 8, 8], strides = [1, 1, 1]} : vector<1x8x32xf32> to vector<1x8x8xf32>
    %44 = vector.extract_strided_slice %13 {offsets = [0, 0, 8], sizes = [1, 8, 8], strides = [1, 1, 1]} : vector<1x8x32xf32> to vector<1x8x8xf32>
    %45 = vector.extract_strided_slice %20 {offsets = [0, 0, 8], sizes = [1, 8, 8], strides = [1, 1, 1]} : vector<1x8x32xf32> to vector<1x8x8xf32>
    %46 = arith.truncf %43 : vector<1x8x8xf32> to vector<1x8x8xbf16>
    %47 = arith.truncf %44 : vector<1x8x8xf32> to vector<1x8x8xbf16>
    "tpu.trace_start"() <{level = 10 : i32, message = "bqd,bkd->bqk"}> : () -> ()
    %cst_24 = arith.constant dense<0.000000e+00> : vector<1x8x8xf32>
    %48 = tpu.matmul %46, %47, %cst_24 {dimension_numbers = #tpu.dot_dimension_numbers<[2], [2], [1], [1], [0, 0, 0, 1, 1, 1], [0], [0]>} : vector<1x8x8xbf16>, vector<1x8x8xbf16>, vector<1x8x8xf32> -> vector<1x8x8xf32>
    "tpu.trace_stop"() : () -> ()
    %cst_25 = arith.constant dense<0xFF800000> : vector<1x8xf32>
    %49 = vector.multi_reduction <maximumf>, %48, %cst_25 [2] : vector<1x8x8xf32> to vector<1x8xf32>
    %50 = vector.shape_cast %49 : vector<1x8xf32> to vector<1x8x1xf32>
    %51 = vector.broadcast %50 : vector<1x8x1xf32> to vector<1x8x8xf32>
    %52 = arith.subf %48, %51 : vector<1x8x8xf32>
    %53 = math.exp %52 : vector<1x8x8xf32>
    %cst_26 = arith.constant dense<0.000000e+00> : vector<1x8xf32>
    %54 = vector.multi_reduction <add>, %53, %cst_26 [2] : vector<1x8x8xf32> to vector<1x8xf32>
    %55 = vector.shape_cast %54 : vector<1x8xf32> to vector<1x8x1xf32>
    %56 = tpu.reciprocal %55 : vector<1x8x1xf32> -> vector<1x8x1xf32>
    %57 = vector.broadcast %56 : vector<1x8x1xf32> to vector<1x8x8xf32>
    %58 = arith.mulf %53, %57 : vector<1x8x8xf32>
    %c1 = arith.constant 1 : index
    %c0_27 = arith.constant 0 : index
    %c0_28 = arith.constant 0 : index
    %c0_29 = arith.constant 0 : index
    %59 = vector.load %arg13[%c1, %c0_27, %c0_28, %c0_29] : memref<4x1x8x8xf32, #tpu.memory_space<vmem>>, vector<1x1x8x8xf32>
    %60 = vector.shape_cast %59 : vector<1x1x8x8xf32> to vector<1x8x8xf32>
    %61 = vector.shape_cast %58 : vector<1x8x8xf32> to vector<1x1x8x8xf32>
    tpu.vector_store %arg13[%c1, %c0_27, %c0_28, %c0_29], %61 {strides = array<i32>} : memref<4x1x8x8xf32, #tpu.memory_space<vmem>>, vector<1x1x8x8xf32>,
    %62 = arith.truncf %58 : vector<1x8x8xf32> to vector<1x8x8xbf16>
    %63 = arith.truncf %45 : vector<1x8x8xf32> to vector<1x8x8xbf16>
    "tpu.trace_start"() <{level = 10 : i32, message = "bqk,bkd->bqd"}> : () -> ()
    %cst_30 = arith.constant dense<0.000000e+00> : vector<1x8x8xf32>
    %64 = tpu.matmul %62, %63, %cst_30 {dimension_numbers = #tpu.dot_dimension_numbers<[2], [1], [1], [2], [0, 0, 0, 1, 1, 2], [0], [0]>} : vector<1x8x8xbf16>, vector<1x8x8xbf16>, vector<1x8x8xf32> -> vector<1x8x8xf32>
    "tpu.trace_stop"() : () -> ()
    %65 = vector.extract_strided_slice %6 {offsets = [0, 0, 16], sizes = [1, 8, 8], strides = [1, 1, 1]} : vector<1x8x32xf32> to vector<1x8x8xf32>
    %66 = vector.extract_strided_slice %13 {offsets = [0, 0, 16], sizes = [1, 8, 8], strides = [1, 1, 1]} : vector<1x8x32xf32> to vector<1x8x8xf32>
    %67 = vector.extract_strided_slice %20 {offsets = [0, 0, 16], sizes = [1, 8, 8], strides = [1, 1, 1]} : vector<1x8x32xf32> to vector<1x8x8xf32>
    %68 = arith.truncf %65 : vector<1x8x8xf32> to vector<1x8x8xbf16>
    %69 = arith.truncf %66 : vector<1x8x8xf32> to vector<1x8x8xbf16>
    "tpu.trace_start"() <{level = 10 : i32, message = "bqd,bkd->bqk"}> : () -> ()
    %cst_31 = arith.constant dense<0.000000e+00> : vector<1x8x8xf32>
    %70 = tpu.matmul %68, %69, %cst_31 {dimension_numbers = #tpu.dot_dimension_numbers<[2], [2], [1], [1], [0, 0, 0, 1, 1, 1], [0], [0]>} : vector<1x8x8xbf16>, vector<1x8x8xbf16>, vector<1x8x8xf32> -> vector<1x8x8xf32>
    "tpu.trace_stop"() : () -> ()
    %cst_32 = arith.constant dense<0xFF800000> : vector<1x8xf32>
    %71 = vector.multi_reduction <maximumf>, %70, %cst_32 [2] : vector<1x8x8xf32> to vector<1x8xf32>
    %72 = vector.shape_cast %71 : vector<1x8xf32> to vector<1x8x1xf32>
    %73 = vector.broadcast %72 : vector<1x8x1xf32> to vector<1x8x8xf32>
    %74 = arith.subf %70, %73 : vector<1x8x8xf32>
    %75 = math.exp %74 : vector<1x8x8xf32>
    %cst_33 = arith.constant dense<0.000000e+00> : vector<1x8xf32>
    %76 = vector.multi_reduction <add>, %75, %cst_33 [2] : vector<1x8x8xf32> to vector<1x8xf32>
    %77 = vector.shape_cast %76 : vector<1x8xf32> to vector<1x8x1xf32>
    %78 = tpu.reciprocal %77 : vector<1x8x1xf32> -> vector<1x8x1xf32>
    %79 = vector.broadcast %78 : vector<1x8x1xf32> to vector<1x8x8xf32>
    %80 = arith.mulf %75, %79 : vector<1x8x8xf32>
    %c2 = arith.constant 2 : index
    %c0_34 = arith.constant 0 : index
    %c0_35 = arith.constant 0 : index
    %c0_36 = arith.constant 0 : index
    %81 = vector.load %arg13[%c2, %c0_34, %c0_35, %c0_36] : memref<4x1x8x8xf32, #tpu.memory_space<vmem>>, vector<1x1x8x8xf32>
    %82 = vector.shape_cast %81 : vector<1x1x8x8xf32> to vector<1x8x8xf32>
    %83 = vector.shape_cast %80 : vector<1x8x8xf32> to vector<1x1x8x8xf32>
    tpu.vector_store %arg13[%c2, %c0_34, %c0_35, %c0_36], %83 {strides = array<i32>} : memref<4x1x8x8xf32, #tpu.memory_space<vmem>>, vector<1x1x8x8xf32>,
    %84 = arith.truncf %80 : vector<1x8x8xf32> to vector<1x8x8xbf16>
    %85 = arith.truncf %67 : vector<1x8x8xf32> to vector<1x8x8xbf16>
    "tpu.trace_start"() <{level = 10 : i32, message = "bqk,bkd->bqd"}> : () -> ()
    %cst_37 = arith.constant dense<0.000000e+00> : vector<1x8x8xf32>
    %86 = tpu.matmul %84, %85, %cst_37 {dimension_numbers = #tpu.dot_dimension_numbers<[2], [1], [1], [2], [0, 0, 0, 1, 1, 2], [0], [0]>} : vector<1x8x8xbf16>, vector<1x8x8xbf16>, vector<1x8x8xf32> -> vector<1x8x8xf32>
    "tpu.trace_stop"() : () -> ()
    %87 = vector.extract_strided_slice %6 {offsets = [0, 0, 24], sizes = [1, 8, 8], strides = [1, 1, 1]} : vector<1x8x32xf32> to vector<1x8x8xf32>
    %88 = vector.extract_strided_slice %13 {offsets = [0, 0, 24], sizes = [1, 8, 8], strides = [1, 1, 1]} : vector<1x8x32xf32> to vector<1x8x8xf32>
    %89 = vector.extract_strided_slice %20 {offsets = [0, 0, 24], sizes = [1, 8, 8], strides = [1, 1, 1]} : vector<1x8x32xf32> to vector<1x8x8xf32>
    %90 = arith.truncf %87 : vector<1x8x8xf32> to vector<1x8x8xbf16>
    %91 = arith.truncf %88 : vector<1x8x8xf32> to vector<1x8x8xbf16>
    "tpu.trace_start"() <{level = 10 : i32, message = "bqd,bkd->bqk"}> : () -> ()
    %cst_38 = arith.constant dense<0.000000e+00> : vector<1x8x8xf32>
    %92 = tpu.matmul %90, %91, %cst_38 {dimension_numbers = #tpu.dot_dimension_numbers<[2], [2], [1], [1], [0, 0, 0, 1, 1, 1], [0], [0]>} : vector<1x8x8xbf16>, vector<1x8x8xbf16>, vector<1x8x8xf32> -> vector<1x8x8xf32>
    "tpu.trace_stop"() : () -> ()
    %cst_39 = arith.constant dense<0xFF800000> : vector<1x8xf32>
    %93 = vector.multi_reduction <maximumf>, %92, %cst_39 [2] : vector<1x8x8xf32> to vector<1x8xf32>
    %94 = vector.shape_cast %93 : vector<1x8xf32> to vector<1x8x1xf32>
    %95 = vector.broadcast %94 : vector<1x8x1xf32> to vector<1x8x8xf32>
    %96 = arith.subf %92, %95 : vector<1x8x8xf32>
    %97 = math.exp %96 : vector<1x8x8xf32>
    %cst_40 = arith.constant dense<0.000000e+00> : vector<1x8xf32>
    %98 = vector.multi_reduction <add>, %97, %cst_40 [2] : vector<1x8x8xf32> to vector<1x8xf32>
    %99 = vector.shape_cast %98 : vector<1x8xf32> to vector<1x8x1xf32>
    %100 = tpu.reciprocal %99 : vector<1x8x1xf32> -> vector<1x8x1xf32>
    %101 = vector.broadcast %100 : vector<1x8x1xf32> to vector<1x8x8xf32>
    %102 = arith.mulf %97, %101 : vector<1x8x8xf32>
    %c3 = arith.constant 3 : index
    %c0_41 = arith.constant 0 : index
    %c0_42 = arith.constant 0 : index
    %c0_43 = arith.constant 0 : index
    %103 = vector.load %arg13[%c3, %c0_41, %c0_42, %c0_43] : memref<4x1x8x8xf32, #tpu.memory_space<vmem>>, vector<1x1x8x8xf32>
    %104 = vector.shape_cast %103 : vector<1x1x8x8xf32> to vector<1x8x8xf32>
    %105 = vector.shape_cast %102 : vector<1x8x8xf32> to vector<1x1x8x8xf32>
    tpu.vector_store %arg13[%c3, %c0_41, %c0_42, %c0_43], %105 {strides = array<i32>} : memref<4x1x8x8xf32, #tpu.memory_space<vmem>>, vector<1x1x8x8xf32>,
    %106 = arith.truncf %102 : vector<1x8x8xf32> to vector<1x8x8xbf16>
    %107 = arith.truncf %89 : vector<1x8x8xf32> to vector<1x8x8xbf16>
    "tpu.trace_start"() <{level = 10 : i32, message = "bqk,bkd->bqd"}> : () -> ()
    %cst_44 = arith.constant dense<0.000000e+00> : vector<1x8x8xf32>
    %108 = tpu.matmul %106, %107, %cst_44 {dimension_numbers = #tpu.dot_dimension_numbers<[2], [1], [1], [2], [0, 0, 0, 1, 1, 2], [0], [0]>} : vector<1x8x8xbf16>, vector<1x8x8xbf16>, vector<1x8x8xf32> -> vector<1x8x8xf32>
    "tpu.trace_stop"() : () -> ()
    %109 = tpu.concatenate %42, %64, %86, %108 in 2 : vector<1x8x8xf32>, vector<1x8x8xf32>, vector<1x8x8xf32>, vector<1x8x8xf32> -> vector<1x8x32xf32>
    %110 = vector.shape_cast %109 : vector<1x8x32xf32> to vector<8x32xf32>
    %c0_45 = arith.constant 0 : index
    %c0_46 = arith.constant 0 : index
    %111 = vector.load %arg7[%c0_45, %c0_46] : memref<32x32xf32, #tpu.memory_space<vmem>>, vector<32x32xf32>
    %112 = arith.truncf %1 : vector<8x32xf32> to vector<8x32xbf16>
    %113 = arith.truncf %111 : vector<32x32xf32> to vector<32x32xbf16>
    %cst_47 = arith.constant dense<0.000000e+00> : vector<8x32xf32>
    %114 = tpu.matmul %112, %113, %cst_47 {dimension_numbers = #tpu.dot_dimension_numbers<[1], [1], [0], [0], [0, 0, 1, 0], [], []>} : vector<8x32xbf16>, vector<32x32xbf16>, vector<8x32xf32> -> vector<8x32xf32>
    %c0_48 = arith.constant 0 : index
    %c0_49 = arith.constant 0 : index
    %115 = vector.load %arg8[%c0_48, %c0_49] : memref<32x32xf32, #tpu.memory_space<vmem>>, vector<32x32xf32>
    %116 = arith.truncf %110 : vector<8x32xf32> to vector<8x32xbf16>
    %117 = arith.truncf %115 : vector<32x32xf32> to vector<32x32xbf16>
    %cst_50 = arith.constant dense<0.000000e+00> : vector<8x32xf32>
    %118 = tpu.matmul %116, %117, %cst_50 {dimension_numbers = #tpu.dot_dimension_numbers<[1], [1], [0], [0], [0, 0, 1, 0], [], []>} : vector<8x32xbf16>, vector<32x32xbf16>, vector<8x32xf32> -> vector<8x32xf32>
    %119 = arith.addf %114, %118 : vector<8x32xf32>
    %c0_51 = arith.constant 0 : index
    %c0_52 = arith.constant 0 : index
    %120 = vector.load %arg9[%c0_51, %c0_52] : memref<1x32xf32, #tpu.memory_space<vmem>>, vector<1x32xf32>
    %121 = vector.broadcast %120 : vector<1x32xf32> to vector<8x32xf32>
    %122 = arith.addf %119, %121 : vector<8x32xf32>
    %123 = arith.addf %122, %1 : vector<8x32xf32>
    %cst_53 = arith.constant dense<0.000000e+00> : vector<8xf32>
    %124 = vector.multi_reduction <add>, %123, %cst_53 [1] : vector<8x32xf32> to vector<8xf32>
    %125 = vector.shape_cast %124 : vector<8xf32> to vector<8x1xf32>
    %cst_54 = arith.constant 3.200000e+01 : f32
    %126 = vector.broadcast %cst_54 : f32 to vector<8x1xf32>
    %127 = arith.divf %125, %126 : vector<8x1xf32>
    %128 = vector.broadcast %127 : vector<8x1xf32> to vector<8x32xf32>
    %129 = arith.subf %123, %128 : vector<8x32xf32>
    %130 = arith.mulf %129, %129 : vector<8x32xf32>
    %cst_55 = arith.constant dense<0.000000e+00> : vector<8xf32>
    %131 = vector.multi_reduction <add>, %130, %cst_55 [1] : vector<8x32xf32> to vector<8xf32>
    %132 = vector.shape_cast %131 : vector<8xf32> to vector<8x1xf32>
    %cst_56 = arith.constant 3.200000e+01 : f32
    %133 = vector.broadcast %cst_56 : f32 to vector<8x1xf32>
    %134 = arith.divf %132, %133 : vector<8x1xf32>
    %135 = vector.broadcast %127 : vector<8x1xf32> to vector<8x32xf32>
    %136 = arith.subf %123, %135 : vector<8x32xf32>
    %cst_57 = arith.constant 9.99999974E-6 : f32
    %137 = vector.broadcast %cst_57 : f32 to vector<8x1xf32>
    %138 = arith.addf %134, %137 : vector<8x1xf32>
    %139 = math.rsqrt %138 : vector<8x1xf32>
    %140 = vector.broadcast %139 : vector<8x1xf32> to vector<8x32xf32>
    %141 = arith.mulf %136, %140 : vector<8x32xf32>
    %c0_58 = arith.constant 0 : index
    %c0_59 = arith.constant 0 : index
    %142 = vector.load %arg10[%c0_58, %c0_59] : memref<1x32xf32, #tpu.memory_space<vmem>>, vector<1x32xf32>
    %143 = vector.broadcast %142 : vector<1x32xf32> to vector<8x32xf32>
    %144 = arith.mulf %141, %143 : vector<8x32xf32>
    %c0_60 = arith.constant 0 : index
    %c0_61 = arith.constant 0 : index
    %145 = vector.load %arg11[%c0_60, %c0_61] : memref<1x32xf32, #tpu.memory_space<vmem>>, vector<1x32xf32>
    %146 = vector.broadcast %145 : vector<1x32xf32> to vector<8x32xf32>
    %147 = arith.addf %144, %146 : vector<8x32xf32>
    %148 = vector.shape_cast %147 : vector<8x32xf32> to vector<1x8x32xf32>
    %c0_62 = arith.constant 0 : index
    %c0_63 = arith.constant 0 : index
    %c0_64 = arith.constant 0 : index
    %149 = vector.load %arg12[%c0_62, %c0_63, %c0_64] : memref<1x8x32xf32, #tpu.memory_space<vmem>>, vector<1x8x32xf32>
    tpu.vector_store %arg12[%c0_62, %c0_63, %c0_64], %148 {strides = array<i32>} : memref<1x8x32xf32, #tpu.memory_space<vmem>>, vector<1x8x32xf32>,
    return
  }
  func.func @transform_0(%arg0: i32) -> (i32, i32, i32) {
    %c0_i32 = arith.constant 0 : i32
    %c0_i32_0 = arith.constant 0 : i32
    %c0_i32_1 = arith.constant 0 : i32
    return %arg0, %c0_i32, %c0_i32_0 : i32, i32, i32
  }
  func.func @transform_1(%arg0: i32) -> (i32, i32, i32) {
    %c0_i32 = arith.constant 0 : i32
    %c0_i32_0 = arith.constant 0 : i32
    %c0_i32_1 = arith.constant 0 : i32
    return %arg0, %c0_i32, %c0_i32_0 : i32, i32, i32
  }
  func.func @transform_2(%arg0: i32) -> (i32, i32, i32) {
    %c0_i32 = arith.constant 0 : i32
    %c0_i32_0 = arith.constant 0 : i32
    %c0_i32_1 = arith.constant 0 : i32
    return %arg0, %c0_i32, %c0_i32_0 : i32, i32, i32
  }
  func.func @transform_3(%arg0: i32) -> (i32, i32) {
    %c0_i32 = arith.constant 0 : i32
    %c0_i32_0 = arith.constant 0 : i32
    %c0_i32_1 = arith.constant 0 : i32
    return %c0_i32, %c0_i32_0 : i32, i32
  }
  func.func @transform_4(%arg0: i32) -> (i32, i32) {
    %c0_i32 = arith.constant 0 : i32
    %c0_i32_0 = arith.constant 0 : i32
    %c0_i32_1 = arith.constant 0 : i32
    return %c0_i32, %c0_i32_0 : i32, i32
  }
  func.func @transform_5(%arg0: i32) -> (i32, i32) {
    %c0_i32 = arith.constant 0 : i32
    %c0_i32_0 = arith.constant 0 : i32
    %c0_i32_1 = arith.constant 0 : i32
    return %c0_i32, %c0_i32_0 : i32, i32
  }
  func.func @transform_6(%arg0: i32) -> (i32, i32) {
    %c0_i32 = arith.constant 0 : i32
    %c0_i32_0 = arith.constant 0 : i32
    %c0_i32_1 = arith.constant 0 : i32
    return %c0_i32, %c0_i32_0 : i32, i32
  }
  func.func @transform_7(%arg0: i32) -> (i32, i32) {
    %c0_i32 = arith.constant 0 : i32
    %c0_i32_0 = arith.constant 0 : i32
    %c0_i32_1 = arith.constant 0 : i32
    return %c0_i32, %c0_i32_0 : i32, i32
  }
  func.func @transform_8(%arg0: i32) -> (i32, i32) {
    %c0_i32 = arith.constant 0 : i32
    %c0_i32_0 = arith.constant 0 : i32
    %c0_i32_1 = arith.constant 0 : i32
    return %c0_i32, %c0_i32_0 : i32, i32
  }
  func.func @transform_9(%arg0: i32) -> (i32, i32) {
    %c0_i32 = arith.constant 0 : i32
    %c0_i32_0 = arith.constant 0 : i32
    %c0_i32_1 = arith.constant 0 : i32
    return %c0_i32, %c0_i32_0 : i32, i32
  }
  func.func @transform_10(%arg0: i32) -> (i32, i32) {
    %c0_i32 = arith.constant 0 : i32
    %c0_i32_0 = arith.constant 0 : i32
    %c0_i32_1 = arith.constant 0 : i32
    return %c0_i32, %c0_i32_0 : i32, i32
  }
  func.func @transform_11(%arg0: i32) -> (i32, i32, i32) {
    %c0_i32 = arith.constant 0 : i32
    %c0_i32_0 = arith.constant 0 : i32
    %c0_i32_1 = arith.constant 0 : i32
    return %arg0, %c0_i32, %c0_i32_0 : i32, i32, i32
  }
  func.func @transform_12(%arg0: i32) -> (i32, i32, i32, i32) {
    %c0_i32 = arith.constant 0 : i32
    %c0_i32_0 = arith.constant 0 : i32
    %c0_i32_1 = arith.constant 0 : i32
    %c0_i32_2 = arith.constant 0 : i32
    return %c0_i32, %arg0, %c0_i32_0, %c0_i32_1 : i32, i32, i32, i32
  }
}

</mosaic_0001>

<bundles_post_ra>
// kernel: tpu_custom_call.1
= control target key start
LH: loop header
LB: loop body
LE: loop exit
PB: predicated region body
PF: predicated region fallthrough
CT: control target
= control target key end

     0   :  { %s2906_s0 = inlined_call_operand.hbm [shape: f32[2,8,32], index: 0, kind: input, shape index: {}]   ;;  %s2907_s1 = inlined_call_operand.hbm [shape: f32[2,8,32], index: 1, kind: input, shape index: {}]   ;;  %s2908_s2 = inlined_call_operand.hbm [shape: f32[2,8,32], index: 2, kind: input, shape index: {}]   ;;  %s2909_s3 = inlined_call_operand.hbm [shape: f32[32,32], index: 3, kind: input, shape index: {}]   ;;  %s2910_s4 = inlined_call_operand.hbm [shape: f32[32,32], index: 4, kind: input, shape index: {}]   ;;  %s2911_s5 = inlined_call_operand.hbm [shape: f32[32,32], index: 5, kind: input, shape index: {}]   ;;  %s2912_s6 = inlined_call_operand.hbm [shape: f32[32,32], index: 6, kind: input, shape index: {}]   ;;  %s2913_s7 = inlined_call_operand.hbm [shape: f32[32,32], index: 7, kind: input, shape index: {}]   ;;  %s2914_s8 = inlined_call_operand.vmem [shape: f32[1,32], index: 8, kind: input, shape index: {}]   ;;  %s2915_s9 = inlined_call_operand.vmem [shape: f32[1,32], index: 9, kind: input, shape index: {}]   ;;  %s2916_s10 = inlined_call_operand.vmem [shape: f32[1,32], index: 10, kind: input, shape index: {}]   ;;  %s2917_s11 = inlined_call_operand.hbm [shape: f32[2,8,32], index: 11, kind: output, shape index: {0}]   ;;  %s2918_s12 = inlined_call_operand.hbm [shape: f32[4,2,8,8], index: 12, kind: output, shape index: {1}]  }
   0x1   :  { %2947 = sst [smem:[#allocation33_spill]] %s2907_s1 }
   0x2   :  { %2948 = sst [smem:[#allocation34_spill]] %s2909_s3 }
   0x3   :  { %2949 = sst [smem:[#allocation35_spill]] %s2911_s5 }
   0x4   :  { %2950 = sst [smem:[#allocation36_spill]] %s2914_s8 }
   0x5   :  { %2951 = sst [smem:[#allocation37_spill]] %s2915_s9 }
   0x6   :  { %2952 = sst [smem:[#allocation38_spill]] %s2916_s10 }
   0x7   :  { %2953 = sst [smem:[#allocation39_spill]] %s2917_s11 }
   0x8   :  { %2954 = sst [smem:[#allocation40_spill]] %s2918_s12 }
   0x9   :  { %18 = vsyncpa [#allocation3], 0 }
   0xa   :  { %20 = vsyncpa [#allocation3 + $0x1], 0 }
   0xb   :  { %21 = vsyncpa [#allocation6], 0 }
   0xc   :  { %23 = vsyncpa [#allocation6 + $0x1], 0 }
   0xd   :  { %24 = vsyncpa [#allocation9], 0 }
   0xe   :  { %25 = vsyncpa [#allocation12], 0 }
   0xf   :  { %26 = vsyncpa [#allocation15], 0 }
  0x10   :  { %27 = vsyncpa [#allocation4], 0 }
  0x11   :  { %29 = vsyncpa [#allocation4 + $0x1], 0 }
  0x12   :  { %30 = vsyncpa [#allocation18], 0 }
  0x13   :  { %32 = vsyncpa [#allocation18 + $0x1], 0  ;;  %s2342_s21 = smov 0   ;;  %s2344_s22 = smov 0  }
  0x14   :  { %s2346_s23 = smov 0   ;;  %s2348_s24 = smov 0  }
  0x15 LB: > { %2955 = sst [smem:[#allocation26_spill]] %s2241_s21  ;;  %s2255_s25 = smov [#allocation8]   ;;  %s2253_s24 = sphi %s2348_s24, %s3002_s24   ;;  %s2249_s23 = sphi %s2346_s23, %s3006_s23   ;;  %s2245_s22 = sphi %s2344_s22, %s3005_s22   ;;  %s2241_s21 = sphi %s2342_s21, %s3004_s21  }
  0x16   : > { %2956 = sst [smem:[#allocation27_spill]] %s2253_s24  ;;  %s353_s26 = sshll.u32 %s2255_s25, 4  ;;  %s2368_s26 = int_to_ptr.vmem [resolvable:$true] %s353_s26 }
  0x17   : > { %s2363_s27 = sadd.s32 4294967295, %s2253_s24   ;;  %p1599_p0 = scmp.ge.s32.totalorder %s2253_s24, 1 }
  0x18   : > { %2957 = sst [smem:[#allocation28_spill]] %s2363_s27  ;;  %p2931_p1 = scmp.eq.s32.totalorder %s2363_s27, 0 }
  0x19   : > { %p341_p2 = scmp.lt.s32.totalorder %s2253_s24, 3  ;;  %s2256_s29 = smov [#allocation11]  }
  0x1a   : > { %s379_s30 = sshll.u32 %s2256_s29, 4  ;;  %s2960_s3 = sld [smem:[#allocation34_spill]]  ;;  %s2383_s30 = int_to_ptr.vmem [resolvable:$true] %s379_s30 }
  0x1b   : > { %p2370_p3 = pnand %p1599_p0, %p341_p2 }
  0x1d   : > { %s2958_s28 = scalar_select %p2370_p3, 1, 0 }
  0x1e   : > { %p1797_p5 = pneg %p2370_p3 }
  0x20   : > { %p2379_p6 = pnand %p1797_p5, %p2931_p1  ;;  %s1909_s16 = scalar_lea.hbm %s2960_s3, 512 }
  0x21   : > { %p1910_p7 = scmp.ne.s32.totalorder %s2960_s3, %s1909_s16  ;;  %p1916_p11 = scmp.lt.u32.totalorder %s1909_s16, %s2960_s3 }
  0x22   : > { %s2959_s13 = scalar_select %p2379_p6, 1, 0 }
  0x23   : > { %p2393_p8 = pneg %p2379_p6 }
  0x25   : > { %s2961_s19 = scalar_select %p2393_p8, 1, 0 }
  0x26   : > { %p1912_p9 = pnand %p2393_p8, %p1910_p7 }
  0x28   : > { %p1913_p10 = pneg %p1912_p9 }
  0x2a   : > { %p1918_p12 = pnand %p1916_p11, %p1913_p10 }
  0x2c   : > { %1921 = shalt.err (!%p1918_p12)
}
  0x2d   : > { %s1922_s29 = scalar_lea.vmem %s2368_s26, 512  ;;  %p1930_p5 = scmp.lt.s32.totalorder %s2368_s26, %s2368_s26 }
  0x2e   : > { %p1923_p13 = scmp.ne.s32.totalorder %s2368_s26, %s1922_s29  ;;  %p1931_p4 = scmp.lt.s32.totalorder %s1922_s29, %s1922_s29 }
  0x30   : > { %p1925_p0 = pnand %p1923_p13, %p2393_p8  ;;  %p1932_p7 = por %p1931_p4, %p1930_p5 }
  0x32   : > { %p1926_p2 = pneg %p1925_p0 }
  0x34   : > { %p1933_p9 = pnand %p1932_p7, %p1926_p2 }
  0x36   : > { %1936 = shalt.err (!%p1933_p9)
}
  0x37   : > { %s2921_s14 = smov 128   ;;  %s2923_s15 = smov 8  }
  0x38   : > { %1800 = dma.hbm_to_vmem [thread:$0]  (!%p2379_p6), %s2960_s3, 512, %s2368_s26, [#allocation9], %s2921_s14, %s2921_s14, %s2923_s15  }
  0x39   : > { %s2962_s5 = sld [smem:[#allocation35_spill]] }
  0x3f   : > { %s1937_s25 = scalar_lea.hbm %s2962_s5, 512 }
  0x40   : > { %p1938_p4 = scmp.ne.s32.totalorder %s2962_s5, %s1937_s25  ;;  %p1944_p12 = scmp.lt.u32.totalorder %s1937_s25, %s2962_s5 }
  0x42   : > { %p1940_p10 = pnand %p1938_p4, %p2393_p8 }
  0x44   : > { %p1941_p11 = pneg %p1940_p10 }
  0x46   : > { %p1946_p13 = pnand %p1944_p12, %p1941_p11 }
  0x48   : > { %1949 = shalt.err (!%p1946_p13)
}
  0x49   : > { %s1950_s26 = scalar_lea.vmem %s2383_s30, 512  ;;  %p1958_p7 = scmp.lt.s32.totalorder %s2383_s30, %s2383_s30 }
  0x4a   : > { %p1951_p0 = scmp.ne.s32.totalorder %s2383_s30, %s1950_s26  ;;  %p1959_p9 = scmp.lt.s32.totalorder %s1950_s26, %s1950_s26 }
  0x4c   : > { %p1953_p2 = pnand %p1951_p0, %p2393_p8  ;;  %p1960_p4 = por %p1959_p9, %p1958_p7 }
  0x4e   : > { %p1954_p5 = pneg %p1953_p2 }
  0x50   : > { %p1961_p10 = pnand %p1960_p4, %p1954_p5 }
  0x52   : > { %1964 = shalt.err (!%p1961_p10)
}
  0x53   : > { %1806 = dma.hbm_to_vmem [thread:$0]  (!%p2379_p6), %s2962_s5, 512, %s2383_s30, [#allocation12], %s2921_s14, %s2921_s14, %s2923_s15  }
  0x54   : > { %s1598_s11 = sadd.s32 4294967294, %s2253_s24   ;;  %s2445_s16 = sadd.s32 1, %s2253_s24  }
  0x55   : > { %2963 = sst [smem:[#allocation29_spill]] %s2445_s16  ;;  %s42_s17 = ssub.s32 %s2253_s24, %s2445_s16 }
  0x56   : > { %s45_s18 = sadd.s32 1, %s2249_s23  ;;  %p43_p11 = scmp.eq.s32.totalorder %s42_s17, 0 }
  0x57   : > { %p52_p12 = scmp.ne.s32.totalorder %s2249_s23, %s2245_s22  ;;  %p53_p13 = scmp.eq.s32.totalorder %s2253_s24, 0 }
  0x58   : > { %p58_p0 = scmp.ne.s32.totalorder %s2245_s22, %s2241_s21  ;;  %p302_p7 = scmp.eq.s32.totalorder %s2363_s27, 1 }
  0x59   : > { %s2456_s20 = scalar_select %p43_p11, %s2249_s23, %s45_s18  }
  0x5a   : > { %p54_p2 = por %p53_p13, %p52_p12  ;;  %p2460_p5 = por %p2931_p1, %p58_p0 }
  0x5b   : > { %2964 = sst [smem:[#allocation30_spill]] %s2456_s20  ;;  %p308_p9 = scmp.eq.s32.totalorder %s1598_s11, 1 }
  0x5c   : > { %s2965_s25 = scalar_select %p2460_p5, 1, 0 }
  0x5d   : > { %p1835_p4 = scmp.lt.s32.totalorder %s2253_s24, 2  ;;  %s2925_s30 = sand.u32 1, %s2249_s23  }
  0x5e   : > { %p2467_p10 = por %p302_p7, %p52_p12  ;;  %p2471_p3 = por %p308_p9, %p58_p0 }
  0x5f   : > { %s2477_s9 = sshll.u32 %s2925_s30, 3  ;;  %s2480_s10 = sshll.u32 %s2253_s24, 7 }
  0x60   : > { %s2966_s29 = scalar_select %p2467_p10, 1, 0 }
  0x61   : > { %s2968_s26 = scalar_select %p2471_p3, 1, 0 }
  0x62   : > { %2967 = sst [smem:[#allocation31_spill]] %s2966_s29  ;;  %p2482_p11 = pnand %p1835_p4, %p54_p2 }
  0x63   : > { %2969 = sst [smem:[#allocation32_spill]] %s2968_s26  ;;  %s446_s11 = sand.u32 1, %s2253_s24  }
  0x64   : > { %s2970_s17 = scalar_select %p2482_p11, 1, 0 }
  0x65   : > { %s2971_s1 = sld [smem:[#allocation33_spill]]  ;;  %s450_s30 = scalar_lea.vmem [#allocation5], %s2477_s9 }
  0x66   : > { %s457_s3 = sshll.u32 %s450_s30, 4  ;;  %s2259_s5 = smov [#allocation10]   ;;  %s2494_s3 = int_to_ptr.vmem [resolvable:$true] %s457_s3 }
  0x67   : > { %s2496_s20 = sshll.u32 %s2259_s5, 4  ;;  %s2498_s16 = scalar_lea.sflag [#allocation6], %s446_s11  ;;  %s367_s20 = int_to_ptr.vmem [resolvable:$true] %s2496_s20 }
  0x68   : > { %p2504_p13 = pneg %p2482_p11 }
  0x6a   : > { %s2972_s14 = scalar_select %p2504_p13, 1, 0 }
  0x6b   : > { %s2491_s15 = scalar_lea.hbm %s2971_s1, %s2480_s10  ;;  %s1970_s24 = scalar_lea.hbm %s2971_s1, 256 }
  0x6c   : > { %s1965_s26 = scalar_lea.hbm %s2491_s15, 128  ;;  %p1971_p7 = scmp.lt.u32.totalorder %s2491_s15, %s2971_s1 }
  0x6d   : > { %p1966_p12 = scmp.ne.s32.totalorder %s2491_s15, %s1965_s26  ;;  %p1972_p9 = scmp.lt.u32.totalorder %s1970_s24, %s1965_s26 }
  0x6e   : > { %p1974_p1 = scmp.lt.u32.totalorder %s1965_s26, %s2491_s15 }
  0x6f   : > { %p1968_p0 = pnand %p2504_p13, %p1966_p12  ;;  %p1973_p4 = por %p1972_p9, %p1971_p7 }
  0x71   : > { %p1969_p2 = pneg %p1968_p0  ;;  %p1975_p3 = por %p1974_p1, %p1973_p4 }
  0x73   : > { %p1976_p10 = pnand %p1975_p3, %p1969_p2 }
  0x75   : > { %1979 = shalt.err (!%p1976_p10)
}
  0x76   : > { %s1980_s11 = scalar_lea.vmem %s2494_s3, 128  ;;  %s2260_s18 = smov [#allocation5]  }
  0x77   : > { %p1981_p12 = scmp.ne.s32.totalorder %s2494_s3, %s1980_s11  ;;  %s1985_s30 = sshll.u32 %s2260_s18, 4  ;;  %s1986_s30 = int_to_ptr.vmem [resolvable:$false] %s1985_s30 }
  0x78   : > { %s1987_s21 = scalar_lea.vmem %s1986_s30, 256  ;;  %p1988_p6 = scmp.lt.s32.totalorder %s2494_s3, %s1986_s30 }
  0x79   : > { %p1983_p0 = pnand %p1981_p12, %p2504_p13  ;;  %p1989_p8 = scmp.lt.s32.totalorder %s1987_s21, %s1980_s11 }
  0x7b   : > { %p1984_p5 = pneg %p1983_p0  ;;  %p1990_p7 = por %p1989_p8, %p1988_p6 }
  0x7d   : > { %p1991_p9 = pnand %p1990_p7, %p1984_p5 }
  0x7f   : > { %1994 = shalt.err (!%p1991_p9)
}
  0x80   : > { %1819 = dma.hbm_to_vmem [thread:$0]  (!%p2482_p11), %s2491_s15, 128, %s2494_s3, %s2498_s16  }
  0x81   : > { %s1995_s5 = scalar_lea.hbm %s2910_s4, 512  ;;  %p2973_p3 = scmp.ne.s32.totalorder %s2961_s19, 0 }
  0x82   : > { %p1996_p1 = scmp.ne.s32.totalorder %s2910_s4, %s1995_s5  ;;  %p2002_p5 = scmp.lt.u32.totalorder %s1995_s5, %s2910_s4 }
  0x84   : > { %p1998_p6 = pnand %p1996_p1, %p2973_p3 }
  0x86   : > { %p1999_p8 = pneg %p1998_p6 }
  0x88   : > { %p2004_p10 = pnand %p2002_p5, %p1999_p8 }
  0x8a   : > { %2007 = shalt.err (!%p2004_p10)
}
  0x8b   : > { %s2008_s21 = scalar_lea.vmem %s367_s20, 512  ;;  %p2016_p0 = scmp.lt.s32.totalorder %s367_s20, %s367_s20 }
  0x8c   : > { %p2009_p2 = scmp.ne.s32.totalorder %s367_s20, %s2008_s21  ;;  %p2017_p7 = scmp.lt.s32.totalorder %s2008_s21, %s2008_s21 }
  0x8e   : > { %p2011_p4 = pnand %p2009_p2, %p2973_p3  ;;  %p2018_p9 = por %p2017_p7, %p2016_p0 }
  0x90   : > { %p2012_p12 = pneg %p2011_p4 }
  0x92   : > { %p2019_p11 = pnand %p2018_p9, %p2012_p12 }
  0x94   : > { %2022 = shalt.err (!%p2019_p11)
}
  0x95   : > { %p2974_p1 = scmp.ne.s32.totalorder %s2959_s13, 0  ;;  %s2975_s1 = smov 8  }
  0x96   : > { %s2976_s3 = smov 128   ;;  %s2261_s26 = smov [#allocation13]  }
  0x97   : > { %1803 = dma.hbm_to_vmem [thread:$0]  (!%p2974_p1), %s2910_s4, 512, %s367_s20, [#allocation9], %s2976_s3, %s2976_s3, %s2975_s1  }
  0x98   : > { %s392_s5 = sshll.u32 %s2261_s26, 4  ;;  %s2262_s18 = smov [#allocation14]   ;;  %s393_s5 = int_to_ptr.vmem [resolvable:$true] %s392_s5 }
  0x99   : > { %s405_s11 = sshll.u32 %s2262_s18, 4  ;;  %s2023_s12 = scalar_lea.hbm %s2912_s6, 512  ;;  %s406_s11 = int_to_ptr.vmem [resolvable:$true] %s405_s11 }
  0x9a   : > { %p2024_p11 = scmp.ne.s32.totalorder %s2912_s6, %s2023_s12  ;;  %p2030_p5 = scmp.lt.u32.totalorder %s2023_s12, %s2912_s6 }
  0x9c   : > { %p2026_p6 = pnand %p2024_p11, %p2973_p3 }
  0x9e   : > { %p2027_p8 = pneg %p2026_p6 }
  0xa0   : > { %p2032_p10 = pnand %p2030_p5, %p2027_p8 }
  0xa2   : > { %2035 = shalt.err (!%p2032_p10)
}
  0xa3   : > { %s2036_s20 = scalar_lea.vmem %s393_s5, 512  ;;  %p2044_p0 = scmp.lt.s32.totalorder %s393_s5, %s393_s5 }
  0xa4   : > { %p2037_p2 = scmp.ne.s32.totalorder %s393_s5, %s2036_s20  ;;  %p2045_p7 = scmp.lt.s32.totalorder %s2036_s20, %s2036_s20 }
  0xa6   : > { %p2039_p4 = pnand %p2037_p2, %p2973_p3  ;;  %p2046_p9 = por %p2045_p7, %p2044_p0 }
  0xa8   : > { %p2040_p12 = pneg %p2039_p4 }
  0xaa   : > { %p2047_p13 = pnand %p2046_p9, %p2040_p12 }
  0xac   : > { %2050 = shalt.err (!%p2047_p13)
}
  0xad   : > { %1809 = dma.hbm_to_vmem [thread:$0]  (!%p2974_p1), %s2912_s6, 512, %s393_s5, [#allocation12], %s2976_s3, %s2976_s3, %s2975_s1  }
  0xae   : > { %s2051_s24 = scalar_lea.hbm %s2913_s7, 512 }
  0xaf   : > { %p2052_p11 = scmp.ne.s32.totalorder %s2913_s7, %s2051_s24  ;;  %p2058_p8 = scmp.lt.u32.totalorder %s2051_s24, %s2913_s7 }
  0xb1   : > { %p2054_p13 = pnand %p2052_p11, %p2973_p3 }
  0xb3   : > { %p2055_p6 = pneg %p2054_p13 }
  0xb5   : > { %p2060_p5 = pnand %p2058_p8, %p2055_p6 }
  0xb7   : > { %2063 = shalt.err (!%p2060_p5)
}
  0xb8   : > { %s2064_s15 = scalar_lea.vmem %s406_s11, 512  ;;  %p2072_p12 = scmp.lt.s32.totalorder %s406_s11, %s406_s11 }
  0xb9   : > { %p2065_p10 = scmp.ne.s32.totalorder %s406_s11, %s2064_s15  ;;  %p2073_p0 = scmp.lt.s32.totalorder %s2064_s15, %s2064_s15 }
  0xbb   : > { %p2067_p2 = pnand %p2065_p10, %p2973_p3  ;;  %p2074_p7 = por %p2073_p0, %p2072_p12 }
  0xbd   : > { %p2068_p4 = pneg %p2067_p2 }
  0xbf   : > { %p2075_p9 = pnand %p2074_p7, %p2068_p4 }
  0xc1   : > { %2078 = shalt.err (!%p2075_p9)
}
  0xc2   : > { %1812 = dma.hbm_to_vmem [thread:$0]  (!%p2974_p1), %s2913_s7, 512, %s406_s11, [#allocation15], %s2976_s3, %s2976_s3, %s2975_s1  }
  0xc3   : > { %s2596_s12 = scalar_lea.hbm %s2906_s0, %s2480_s10  ;;  %s432_s13 = scalar_lea.vmem [#allocation2], %s2477_s9 }
  0xc4   : > { %s439_s27 = sshll.u32 %s432_s13, 4  ;;  %s2605_s26 = scalar_lea.hbm %s2908_s2, %s2480_s10  ;;  %s2599_s27 = int_to_ptr.vmem [resolvable:$true] %s439_s27 }
  0xc5   : > { %s2977_s18 = sand.u32 1, %s2249_s23   ;;  %s2079_s3 = scalar_lea.hbm %s2596_s12, 128 }
  0xc6   : > { %s429_s1 = scalar_lea.sflag [#allocation3], %s2977_s18  ;;  %p2080_p3 = scmp.ne.s32.totalorder %s2596_s12, %s2079_s3 }
  0xc7   : > { %p2978_p1 = scmp.ne.s32.totalorder %s2972_s14, 0  ;;  %s2084_s21 = scalar_lea.hbm %s2906_s0, 256 }
  0xc8   : > { %p2085_p6 = scmp.lt.u32.totalorder %s2596_s12, %s2906_s0  ;;  %p2086_p8 = scmp.lt.u32.totalorder %s2084_s21, %s2079_s3 }
  0xc9   : > { %p2082_p11 = pnand %p2080_p3, %p2978_p1  ;;  %p2088_p10 = scmp.lt.u32.totalorder %s2079_s3, %s2596_s12 }
  0xca   : > { %p2087_p5 = por %p2086_p8, %p2085_p6 }
  0xcb   : > { %p2083_p13 = pneg %p2082_p11 }
  0xcc   : > { %p2089_p2 = por %p2088_p10, %p2087_p5 }
  0xce   : > { %p2090_p4 = pnand %p2089_p2, %p2083_p13 }
  0xd0   : > { %2093 = shalt.err (!%p2090_p4)
}
  0xd1   : > { %s2094_s10 = scalar_lea.vmem %s2599_s27, 128  ;;  %s2263_s20 = smov [#allocation2]  }
  0xd2   : > { %p2095_p12 = scmp.ne.s32.totalorder %s2599_s27, %s2094_s10  ;;  %s2099_s19 = sshll.u32 %s2263_s20, 4  ;;  %s2100_s19 = int_to_ptr.vmem [resolvable:$false] %s2099_s19 }
  0xd3   : > { %s2101_s8 = scalar_lea.vmem %s2100_s19, 256  ;;  %p2102_p9 = scmp.lt.s32.totalorder %s2599_s27, %s2100_s19 }
  0xd4   : > { %p2097_p0 = pnand %p2095_p12, %p2978_p1  ;;  %p2103_p3 = scmp.lt.s32.totalorder %s2101_s8, %s2094_s10 }
  0xd6   : > { %p2098_p7 = pneg %p2097_p0  ;;  %p2104_p11 = por %p2103_p3, %p2102_p9 }
  0xd8   : > { %p2105_p6 = pnand %p2104_p11, %p2098_p7 }
  0xda   : > { %2108 = shalt.err (!%p2105_p6)
}
  0xdb   : > { %p2979_p13 = scmp.ne.s32.totalorder %s2970_s17, 0  ;;  %s468_s13 = scalar_lea.vmem [#allocation7], %s2477_s9 }
  0xdc   : > { %s475_s29 = sshll.u32 %s468_s13, 4  ;;  %s2109_s24 = scalar_lea.hbm %s2605_s26, 128  ;;  %s476_s29 = int_to_ptr.vmem [resolvable:$true] %s475_s29 }
  0xdd   : > { %1816 = dma.hbm_to_vmem [thread:$0]  (!%p2979_p13), %s2596_s12, 128, %s2599_s27, %s429_s1  }
  0xde   : > { %p2110_p8 = scmp.ne.s32.totalorder %s2605_s26, %s2109_s24  ;;  %s2114_s11 = scalar_lea.hbm %s2908_s2, 256 }
  0xdf   : > { %p2115_p2 = scmp.lt.u32.totalorder %s2605_s26, %s2908_s2  ;;  %p2116_p4 = scmp.lt.u32.totalorder %s2114_s11, %s2109_s24 }
  0xe0   : > { %p2112_p5 = pnand %p2110_p8, %p2978_p1  ;;  %p2118_p0 = scmp.lt.u32.totalorder %s2109_s24, %s2605_s26 }
  0xe1   : > { %p2117_p12 = por %p2116_p4, %p2115_p2 }
  0xe2   : > { %p2113_p10 = pneg %p2112_p5 }
  0xe3   : > { %p2119_p7 = por %p2118_p0, %p2117_p12 }
  0xe5   : > { %p2120_p9 = pnand %p2119_p7, %p2113_p10 }
  0xe7   : > { %2123 = shalt.err (!%p2120_p9)
}
  0xe8   : > { %s2124_s9 = scalar_lea.vmem %s476_s29, 128  ;;  %s2264_s12 = smov [#allocation7]  }
  0xe9   : > { %p2125_p3 = scmp.ne.s32.totalorder %s476_s29, %s2124_s9  ;;  %s2129_s27 = sshll.u32 %s2264_s12, 4  ;;  %s2130_s27 = int_to_ptr.vmem [resolvable:$false] %s2129_s27 }
  0xea   : > { %s2131_s1 = scalar_lea.vmem %s2130_s27, 256  ;;  %p2132_p8 = scmp.lt.s32.totalorder %s476_s29, %s2130_s27 }
  0xeb   : > { %p2127_p11 = pnand %p2125_p3, %p2978_p1  ;;  %p2133_p5 = scmp.lt.s32.totalorder %s2131_s1, %s2124_s9 }
  0xed   : > { %p2128_p6 = pneg %p2127_p11  ;;  %p2134_p13 = por %p2133_p5, %p2132_p8 }
  0xef   : > { %p2135_p2 = pnand %p2134_p13, %p2128_p6 }
  0xf1   : > { %2138 = shalt.err (!%p2135_p2)
}
  0xf2   : > { %p2980_p4 = scmp.ne.s32.totalorder %s2970_s17, 0  ;;  %p2981_p10 = scmp.ne.s32.totalorder %s2958_s28, 0 }
  0xf3   : > { %s2652_s14 = sand.u32 (!%p2981_p10), 1, %s2245_s22   ;;  %p2982_p1 = scmp.ne.s32.totalorder (!%p2981_p10), %s2965_s25, 0 }
  0xf4   : > { %1822 = dma.hbm_to_vmem [thread:$0]  (!%p2980_p4), %s2605_s26, 128, %s476_s29, %s2498_s16  }
  0xf5   : > { %484 = sbr.rel (%p2981_p10) target bundleno = 2048 (0x800), region = 64  ;;  %s2655_s15 = sshll.u32 (!%p2981_p10), %s2652_s14, 3 }
  0xf6   : > { %s487_s5 = scalar_lea.sflag (!%p2981_p10), [#allocation3], %s2652_s14  ;;  %s490_s10 = scalar_lea.vmem (!%p2981_p10), [#allocation2], %s2655_s15 }
  0xfc   : > { %2212 = dma.done.wait (%p2982_p1), %s487_s5, 128  }
  0xfd   : > { %2214 = vsyncadd (%p2982_p1), %s487_s5, 4294967168  ;;  %s2983_s16 = sld [smem:[#allocation28_spill]]  ;;  %s499_s26 = scalar_lea.vmem [#allocation5], %s2655_s15 }
 0x103   : > { %s495_s28 = sand.u32 1, %s2983_s16  }
 0x104   : > { %s496_s17 = scalar_lea.sflag [#allocation6], %s495_s28 }
 0x105   : > { %2216 = dma.done.wait (%p2982_p1), %s496_s17, 256  }
 0x106   : > { %2218 = vsyncadd (%p2982_p1), %s496_s17, 4294967040  ;;  %s508_s20 = scalar_lea.vmem [#allocation7], %s2655_s15  ;;  %p2984_p13 = scmp.eq.s32.totalorder %s2983_s16, 0 }
 0x108   : > { %2220 = dma.done.wait (%p2984_p13), [#allocation9], 1024   ;;  %p2985_p12 = pmov %p2984_p13 }
 0x10a   : > { %2222 = vsyncadd (%p2985_p12), [#allocation9], 4294966272  ;;  %p2986_p0 = pmov %p2985_p12 }
 0x10c   : > { %2224 = dma.done.wait (%p2986_p0), [#allocation12], 1024   ;;  %p2987_p7 = pmov %p2986_p0 }
 0x10d   : > { %p2988_p9 = pmov %p2986_p0 }
 0x10e   : > { %2226 = vsyncadd (%p2987_p7), [#allocation12], 4294966272 }
 0x10f   : > { %2228 = dma.done.wait (%p2988_p9), [#allocation15], 512   ;;  %p2989_p3 = pmov %p2986_p0 }
 0x110   : > { %v2265_v0 = vmov 0.0   ;;  %vm2266_vm0 = vmmov 0   ;;  %vm593_vm1 = vcmask 261120   ;;  %v644_v1 = vld [vmem:[#allocation10] sm:$0xff]  ;;  %v645_v2 = vld [vmem:[#allocation10 + $0x8] sm:$0xff]  ;;  %v646_v7 = vld [vmem:[#allocation10 + $0x10] sm:$0xff] }
 0x111   : > { %2230 = vsyncadd (%p2989_p3), [#allocation15], 4294966784  ;;  %1687 = vmatprep.subr.bf16.mxu1 %v2265_v0  ;;  %1679 = vmatprep.subr.bf16.mxu0 %v2265_v0  ;;  %v586_v3 = vld [vmem:[#allocation8] sm:$0xff]  ;;  %v649_v4 = vpack.c.bf16 %v645_v2, %v644_v1  ;;  %v587_v5 = vld [vmem:[#allocation8 + $0x8] sm:$0xff]  ;;  %vm759_vm2 = vcmask 64512   ;;  %s2267_s25 = smov 112  }
 0x112   : > { %1691 = vmatprep.mubr.msk.bf16.mxu1 %vm2266_vm0, %v2265_v0  ;;  %1683 = vmatprep.mubr.msk.bf16.mxu0 %vm2266_vm0, %v2265_v0  ;;  %v591_v6 = vpack.c.bf16 %v587_v5, %v586_v3  ;;  %v647_v8 = vld [vmem:[#allocation10 + $0x18] sm:$0xff]  ;;  %v588_v10 = vld [vmem:[#allocation8 + $0x10] sm:$0xff]  ;;  %v643_v17 = vld [vmem:[%s499_s26] sm:$0xff]  ;;  %s2268_s19 = smov 120   ;;  %s2269_s8 = smov 104   ;;  %vm823_vm3 = vcmask 1043456  }
 0x113   : > { %v655_v9 = vsel %vm593_vm1, %v649_v4, 0  ;;  %v589_v11 = vld [vmem:[#allocation8 + $0x18] sm:$0xff]  ;;  %v650_v13 = vpack.c.bf16 %v647_v8, %v646_v7  ;;  %v648_v19 = vpack.c.bf16 %v643_v17, %v643_v17  ;;  %v701_v21 = vld [vmem:[#allocation11] sm:$0xff]  ;;  %v702_v22 = vld [vmem:[#allocation11 + $0x8] sm:$0xff]  ;;  %s1622_s13 = sshll.u32 %s2652_s14, 5  ;;  %s2270_s24 = smov 8  }
 0x114   : > { %1688 = vmatpush3.bf16.xpose.msra.mxu1 %v655_v9  ;;  %v598_v12 = vsel %vm593_vm1, %v591_v6, 0  ;;  %v592_v14 = vpack.c.bf16 %v589_v11, %v588_v10  ;;  %v2698_v18 = vld [vmem:[%s490_s10] sm:$0xff]  ;;  %v706_v23 = vpack.c.bf16 %v702_v22, %v701_v21  ;;  %s2768_s29 = scalar_lea.vmem [#allocation17], %s1622_s13  ;;  %s2271_s18 = smov 16   ;;  %vm1219_vm4 = vcmask 130048  }
 0x115   : > { %1680 = vmatpush3.bf16.xpose.msra.mxu0 %v598_v12  ;;  %1689 = vmatprep.subr.bf16.mxu1 %v2265_v0  ;;  %v658_v15 = vsel %vm593_vm1, %v650_v13, 0  ;;  %v2704_v20 = vpack.c.bf16 %v2698_v18, %v2698_v18  ;;  %v703_v24 = vld [vmem:[#allocation11 + $0x10] sm:$0xff]  ;;  %v704_v25 = vld [vmem:[#allocation11 + $0x18] sm:$0xff]  ;;  %s2272_s3 = smov 24   ;;  %vm1221_vm5 = vcmask 195584   ;;  %s2990_s21 = sld [smem:[#allocation36_spill]] }
 0x116   : > { %1681 = vmatprep.subr.bf16.mxu0 %v2265_v0  ;;  %v601_v16 = vsel %vm593_vm1, %v592_v14, 0  ;;  %v712_v26 = vsel %vm593_vm1, %v706_v23, 0  ;;  %v707_v27 = vpack.c.bf16 %v704_v25, %v703_v24  ;;  %v700_v29 = vld [vmem:[%s508_s20] sm:$0xff]  ;;  %s2991_s9 = sld [smem:[#allocation31_spill]]  ;;  %s1644_s12 = sshll.u32 %s2983_s16, 7 }
 0x117   : > { %v705_v30 = vpack.c.bf16 %v700_v29, %v700_v29  ;;  %s2992_s5 = sld [smem:[#allocation40_spill]]  ;;  %s1402_s28 = sshll.u32 %s2768_s29, 4  ;;  %s2822_s28 = int_to_ptr.vmem [resolvable:$true] %s1402_s28 }
 0x118   : > { %v715_v28 = vsel %vm593_vm1, %v707_v27, 0  ;;  %s1377_s17 = scalar_lea.sflag [#allocation18], %s2652_s14  ;;  %s2139_s26 = scalar_lea.vmem %s2822_s28, 512 }
 0x119   : > { %p2140_p11 = scmp.ne.s32.totalorder %s2822_s28, %s2139_s26  ;;  %s2273_s20 = smov [#allocation17]  }
 0x11c   : > { %1690 = vmatpush3.bf16.xpose.msra.mxu1 %v658_v15  ;;  %p2993_p6 = scmp.ne.s32.totalorder %s2991_s9, 0 }
 0x11d   : > { %1682 = vmatpush3.bf16.xpose.msra.mxu0 %v601_v16  ;;  %1703 = vmatprep.subr.bf16.mxu1 %v2265_v0  ;;  %s2819_s10 = scalar_lea.hbm %s2992_s5, %s1644_s12 }
 0x11e   : > { %1695 = vmatprep.subr.bf16.mxu0 %v2265_v0  ;;  %p2141_p8 = pnand %p2140_p11, %p2993_p6 }
 0x120   : > { %p2142_p5 = pneg %p2141_p8 }
 0x123   : > { %1692 = vmatmul.mubr.msk.bf16.vlgmr.msra.gmra.mrb[0].mxu1 %vm593_vm1, %v648_v19 }
 0x124   : > { %1684 = vmatmul.mubr.msk.bf16.vlgmr.msra.gmra.mrb[0].mxu0 %vm593_vm1, %v2704_v20  ;;  %1705 = vmatprep.mubr.msk.bf16.mxu1 %vm2266_vm0, %v2265_v0 }
 0x125   : > { %1699 = vmatprep.mubr.msk.bf16.mxu0 %vm2266_vm0, %v2265_v0  ;;  %1696 = vmatpush3.bf16.xpose.msra.mxu0 %v712_v26 }
 0x126   : > { %1697 = vmatprep.subr.bf16.mxu0 %v2265_v0 }
 0x12d   : > { %1698 = vmatpush3.bf16.xpose.msra.mxu0 %v715_v28 }
 0x12e   : > { %1715 = vmatprep.subr.bf16.mxu0 %v2265_v0 }
 0x134   : > { %1700 = vmatmul.mubr.msk.bf16.vlgmr.msra.gmra.mrb[4].mxu0 %vm593_vm1, %v705_v30 }
 0x135   : > { %1717 = vmatprep.mubr.msk.bf16.mxu0 %vm2266_vm0, %v2265_v0 }
 0x1f6   : > { %v694_v31 = vpop.f32.mrb[0].mxu1 }
 0x1f7   : > { %v758_v32 = vpack.c.bf16 %v694_v31, %v694_v31  ;;  %v1693_v33 = vpop.f32.mrb[1].mxu1  ;;  %v637_v34 = vpop.f32.mrb[0].mxu0 }
 0x1f8   : > { %v697_v35 = vpop.f32.mrb[2].mxu1  ;;  %v1685_v36 = vpop.f32.mrb[1].mxu0  ;;  %v757_v38 = vpack.c.bf16 %v637_v34, %v637_v34 }
 0x1f9   : > { %984 = vrot.lane.b32.xlu1 %v758_v32, %s2267_s25  ;;  %871 = vrot.lane.b32.xlu0 %v758_v32, %s2268_s19  ;;  %v1694_v37 = vpop.f32.mrb[3].mxu1  ;;  %v764_v39 = vsel %vm759_vm2, %v758_v32, 0  ;;  %v640_v40 = vpop.f32.mrb[2].mxu0 }
 0x1fa   : > { %1704 = vmatpush3.bf16.xpose.msra.mxu1 %v764_v39  ;;  %v1686_v41 = vpop.f32.mrb[3].mxu0 }
 0x1fb   : > { %1709 = vmatprep.subr.bf16.mxu1 %v2265_v0 }
 0x1fd   : > { %982 = vrot.lane.b32.xlu1 %v757_v38, %s2267_s25  ;;  %868 = vrot.lane.b32.xlu0 %v757_v38, %s2268_s19 }
 0x201   : > { %1094 = vrot.lane.b32.xlu1 %v757_v38, %s2269_s8  ;;  %1096 = vrot.lane.b32.xlu0 %v758_v32, %s2269_s8 }
 0x202   : > { %1706 = vmatmul.mubr.msk.bf16.vlgmr.msra.gmra.mrb[4].mxu1 %vm759_vm2, %v757_v38 }
 0x203   : > { %1711 = vmatprep.mubr.msk.bf16.mxu1 %vm2266_vm0, %v2265_v0 }
 0x207   : > { %v751_v42 = vpop.f32.mrb[4].mxu0 }
 0x208   : > { %v2733_v43 = vpack.c.bf16 %v751_v42, %v751_v42  ;;  %v1701_v44 = vpop.f32.mrb[5].mxu0 }
 0x209   : > { %v754_v45 = vpop.f32.mrb[6].mxu0 }
 0x20a   : > { %v825_v47 = vsel %vm823_vm3, %v2733_v43, 0  ;;  %v1702_v49 = vpop.f32.mrb[7].mxu0 }
 0x20b   : > { %1710 = vmatpush3.bf16.msra.mxu1 %v825_v47 }
 0x20c   : > { %1721 = vmatprep.subr.bf16.mxu1 %v2265_v0 }
 0x26b   : > { %v872_v46 = vpop.permute.xlu0 %871  ;;  %v985_v50 = vpop.permute.xlu1 %984 }
 0x26c   : > { %v877_v48 = vsel %vm759_vm2, %v872_v46, 0  ;;  %v990_v52 = vsel %vm759_vm2, %v985_v50, 0 }
 0x26d   : > { %1716 = vmatpush3.bf16.xpose.msra.mxu0 %v877_v48 }
 0x26e   : > { %1727 = vmatprep.subr.bf16.mxu0 %v2265_v0 }
 0x26f   : > { %v869_v51 = vpop.permute.xlu0 %868  ;;  %v983_v54 = vpop.permute.xlu1 %982 }
 0x273   : > { %v1097_v53 = vpop.permute.xlu0 %1096  ;;  %v1095_v56 = vpop.permute.xlu1 %1094 }
 0x274   : > { %1718 = vmatmul.mubr.msk.bf16.vlgmr.msra.gmra.mrb[8].mxu0 %vm759_vm2, %v869_v51  ;;  %v1102_v55 = vsel %vm759_vm2, %v1097_v53, 0 }
 0x275   : > { %1728 = vmatpush3.bf16.xpose.msra.mxu0 %v990_v52  ;;  %1729 = vmatprep.mubr.msk.bf16.mxu0 %vm2266_vm0, %v2265_v0 }
 0x276   : > { %1739 = vmatprep.subr.bf16.mxu0 %v2265_v0 }
 0x27c   : > { %1730 = vmatmul.mubr.msk.bf16.vlgmr.msra.gmra.mrb[12].mxu0 %vm759_vm2, %v983_v54 }
 0x27d   : > { %1740 = vmatpush3.bf16.xpose.msra.mxu0 %v1102_v55  ;;  %1741 = vmatprep.mubr.msk.bf16.mxu0 %vm2266_vm0, %v2265_v0 }
 0x27e   : > { %1751 = vmatprep.subr.bf16.mxu0 %v2265_v0 }
 0x284   : > { %1742 = vmatmul.mubr.msk.bf16.vlgmr.msra.gmra.mrb[16].mxu0 %vm759_vm2, %v1095_v56 }
 0x285   : > { %1755 = vmatprep.mubr.msk.bf16.mxu0 %vm2266_vm0, %v2265_v0 }
 0x2d5   : > { %v800_v57 = vpop.f32.mrb[4].mxu1 }
 0x2d6   : > { %v1707_v58 = vpop.f32.mrb[5].mxu1  ;;  %v806_v59 = vsel %vm759_vm2, %v800_v57, -inf }
 0x2d7   : > { %807 = vmax.xlane.f32.xlu0 %v806_v59  ;;  %v803_v60 = vpop.f32.mrb[6].mxu1 }
 0x2d8   : > { %v1708_v61 = vpop.f32.mrb[7].mxu1 }
 0x347   : > { %v913_v62 = vpop.f32.mrb[8].mxu0 }
 0x348   : > { %v1719_v63 = vpop.f32.mrb[9].mxu0  ;;  %v919_v1 = vsel %vm759_vm2, %v913_v62, -inf }
 0x349   : > { %920 = vmax.xlane.f32.xlu1 %v919_v1  ;;  %v916_v2 = vpop.f32.mrb[10].mxu0  ;;  %v1230_v63 = vld [vmem:[#allocation14 + $0x8] sm:$0xff]  ;;  %v1223_v1 = vld [vmem:[#allocation13] sm:$0xff] }
 0x34a   : > { %v1720_v3 = vpop.f32.mrb[11].mxu0 }
 0x34b   : > { %v1224_v3 = vld [vmem:[#allocation13 + $0x8] sm:$0xff] }
 0x34f   : > { %v1026_v4 = vpop.f32.mrb[12].mxu0 }
 0x350   : > { %v1731_v5 = vpop.f32.mrb[13].mxu0  ;;  %v1032_v6 = vsel %vm759_vm2, %v1026_v4, -inf }
 0x351   : > { %1033 = vmax.xlane.f32.xlu0 %v1032_v6  ;;  %v1029_v7 = vpop.f32.mrb[14].mxu0 }
 0x352   : > { %v1732_v8 = vpop.f32.mrb[15].mxu0  ;;  %v1225_v7 = vld [vmem:[#allocation13 + $0x10] sm:$0xff] }
 0x353   : > { %v1226_v8 = vld [vmem:[#allocation13 + $0x18] sm:$0xff] }
 0x357   : > { %v1138_v9 = vpop.f32.mrb[16].mxu0 }
 0x358   : > { %v1743_v10 = vpop.f32.mrb[17].mxu0  ;;  %v1144_v11 = vsel %vm759_vm2, %v1138_v9, -inf }
 0x359   : > { %1145 = vmax.xlane.f32.xlu0 %v1144_v11  ;;  %v1141_v12 = vpop.f32.mrb[18].mxu0  ;;  %v1232_v10 = vld [vmem:[#allocation14 + $0x18] sm:$0xff]  ;;  %v1228_v11 = vpack.c.bf16 %v1226_v8, %v1225_v7 }
 0x35a   : > { %v1744_v13 = vpop.f32.mrb[19].mxu0 }
 0x35b   : > { %v1289_v13 = vsel %vm593_vm1, %v1228_v11, 0 }
 0x364   : > { %v808_v14 = vpop.xlane.xlu0 %807 }
 0x365   : > { %v809_v15 = vsub.f32 %v800_v57, %v808_v14 }
 0x367   : > { %v810_v16 = vmul.f32 1.442695, %v809_v15 }
 0x369   : > { %1891 = vpow2.f32 %v810_v16 }
 0x373   : > { %v1892_v17 = vpop.eup %1891 }
 0x374   : > { %v812_v19 = vsel %vm759_vm2, %v1892_v17, 0.0 }
 0x375   : > { %813 = vadd.xlane.f32.xlu1 %v812_v19 }
 0x386   : > { %934 = vrot.lane.b32.xlu1 %v2733_v43, %s2268_s19 }
 0x3d6   : > { %v921_v21 = vpop.xlane.xlu1 %920 }
 0x3d7   : > { %v922_v22 = vsub.f32 %v913_v62, %v921_v21  ;;  %v1229_v62 = vld [vmem:[#allocation14] sm:$0xff] }
 0x3d8   : > { %v1234_v2 = vpack.c.bf16 %v1230_v63, %v1229_v62 }
 0x3d9   : > { %v923_v23 = vmul.f32 1.442695, %v922_v22 }
 0x3da   : > { %v1240_v5 = vsel %vm593_vm1, %v1234_v2, 0 }
 0x3db   : > { %1893 = vpow2.f32 %v923_v23  ;;  %1752 = vmatpush3.bf16.xpose.msra.mxu0 %v1240_v5 }
 0x3dc   : > { %1753 = vmatprep.subr.bf16.mxu0 %v2265_v0 }
 0x3de   : > { %v1034_v24 = vpop.xlane.xlu0 %1033 }
 0x3df   : > { %v1035_v25 = vsub.f32 %v1026_v4, %v1034_v24  ;;  %v1227_v4 = vpack.c.bf16 %v1224_v3, %v1223_v1 }
 0x3e1   : > { %v1036_v26 = vmul.f32 1.442695, %v1035_v25  ;;  %v1286_v6 = vsel %vm593_vm1, %v1227_v4, 0 }
 0x3e3   : > { %1895 = vpow2.f32 %v1036_v26 }
 0x3e5   : > { %v1894_v27 = vpop.eup %1893 }
 0x3e6   : > { %v1146_v28 = vpop.xlane.xlu0 %1145  ;;  %v925_v29 = vsel %vm759_vm2, %v1894_v27, 0.0 }
 0x3e7   : > { %v1147_v30 = vsub.f32 %v1138_v9, %v1146_v28  ;;  %926 = vadd.xlane.f32.xlu0 %v925_v29  ;;  %v1231_v9 = vld [vmem:[#allocation14 + $0x10] sm:$0xff] }
 0x3e8   : > { %v1235_v12 = vpack.c.bf16 %v1232_v10, %v1231_v9 }
 0x3e9   : > { %v1148_v31 = vmul.f32 1.442695, %v1147_v30 }
 0x3ea   : > { %v1243_v15 = vsel %vm593_vm1, %v1235_v12, 0 }
 0x3eb   : > { %1897 = vpow2.f32 %v1148_v31  ;;  %1754 = vmatpush3.bf16.xpose.msra.mxu0 %v1243_v15 }
 0x3ed   : > { %v1896_v32 = vpop.eup %1895 }
 0x3ee   : > { %v1038_v33 = vsel %vm759_vm2, %v1896_v32, 0.0 }
 0x3ef   : > { %1039 = vadd.xlane.f32.xlu1 %v1038_v33 }
 0x3f5   : > { %v1898_v34 = vpop.eup %1897 }
 0x3f6   : > { %v1150_v35 = vsel %vm759_vm2, %v1898_v34, 0.0 }
 0x3f7   : > { %1151 = vadd.xlane.f32.xlu0 %v1150_v35 }
 0x400   : > { %1158 = vrot.lane.b32.xlu1 %v2733_v43, %s2269_s8 }
 0x402   : > { %v814_v36 = vpop.xlane.xlu1 %813 }
 0x403   : > { %1899 = vrcp.f32 %v814_v36 }
 0x406   : > { %v935_v39 = vpop.permute.xlu1 %934 }
 0x407   : > { %v940_v41 = vsel %vm823_vm3, %v935_v39, 0  ;;  %v1639_v39 = vld [vmem:[%s2990_s21] ss:$0 sm:$0xff] }
 0x40d   : > { %v1900_v37 = vpop.eup %1899  ;;  %1046 = vrot.lane.b32.xlu0 %v2733_v43, %s2267_s25  ;;  %s2143_s25 = sshll.u32 %s2273_s20, 4  ;;  %s2144_s25 = int_to_ptr.vmem [resolvable:$false] %s2143_s25 }
 0x40e   : > { %v816_v38 = vmul.f32 %v1900_v37, %v1892_v17  ;;  %s2145_s19 = scalar_lea.vmem %s2144_s25, 1024  ;;  %p2146_p2 = scmp.lt.s32.totalorder %s2822_s28, %s2144_s25 }
 0x40f   : > { %p2147_p4 = scmp.lt.s32.totalorder %s2145_s19, %s2139_s26 }
 0x410   : > { %817 = vst.msk [vmem:[%s2768_s29] sm:$0xff] %vm759_vm2, %v816_v38  ;;  %v818_v40 = vpack.c.bf16 %v816_v38, %v816_v38 }
 0x411   : > { %p2148_p10 = por %p2147_p4, %p2146_p2 }
 0x412   : > { %1712 = vmatmul.mubr.msk.bf16.vlgmr.msra.gmra.mrb[8].mxu1 %vm759_vm2, %v818_v40 }
 0x413   : > { %1722 = vmatpush3.bf16.msra.mxu1 %v940_v41  ;;  %1723 = vmatprep.mubr.msk.bf16.mxu1 %vm2266_vm0, %v2265_v0  ;;  %p2149_p1 = pnand %p2148_p10, %p2142_p5 }
 0x414   : > { %1733 = vmatprep.subr.bf16.mxu1 %v2265_v0 }
 0x474   : > { %v927_v42 = vpop.xlane.xlu0 %926 }
 0x475   : > { %1901 = vrcp.f32 %v927_v42 }
 0x47c   : > { %v1040_v43 = vpop.xlane.xlu1 %1039 }
 0x47d   : > { %1903 = vrcp.f32 %v1040_v43 }
 0x47f   : > { %v1902_v44 = vpop.eup %1901 }
 0x480   : > { %v929_v45 = vmul.f32 %v1902_v44, %v1894_v27  ;;  %v1159_v52 = vpop.permute.xlu1 %1158 }
 0x481   : > { %v1164_v54 = vsel %vm823_vm3, %v1159_v52, 0 }
 0x482   : > { %1629 = vst.msk [vmem:[%s2768_s29 + $0x8] sm:$0xff] %vm759_vm2, %v929_v45  ;;  %v932_v46 = vpack.c.bf16 %v929_v45, %v929_v45 }
 0x484   : > { %1724 = vmatmul.mubr.msk.bf16.vlgmr.msra.gmra.mrb[12].mxu1 %vm759_vm2, %v932_v46  ;;  %v1152_v47 = vpop.xlane.xlu0 %1151 }
 0x485   : > { %1905 = vrcp.f32 %v1152_v47  ;;  %1735 = vmatprep.mubr.msk.bf16.mxu1 %vm2266_vm0, %v2265_v0 }
 0x487   : > { %v1904_v48 = vpop.eup %1903 }
 0x488   : > { %v1042_v49 = vmul.f32 %v1904_v48, %v1896_v32  ;;  %v1047_v50 = vpop.permute.xlu0 %1046 }
 0x489   : > { %v1052_v51 = vsel %vm823_vm3, %v1047_v50, 0 }
 0x48a   : > { %1632 = vst.msk [vmem:[%s2768_s29 + $0x10] sm:$0xff] %vm759_vm2, %v1042_v49  ;;  %1734 = vmatpush3.bf16.msra.mxu1 %v1052_v51  ;;  %v1045_v53 = vpack.c.bf16 %v1042_v49, %v1042_v49 }
 0x48b   : > { %1745 = vmatprep.subr.bf16.mxu1 %v2265_v0 }
 0x48d   : > { %1736 = vmatmul.mubr.msk.bf16.vlgmr.msra.gmra.mrb[16].mxu1 %vm759_vm2, %v1045_v53 }
 0x48e   : > { %1746 = vmatpush3.bf16.msra.mxu1 %v1164_v54  ;;  %1747 = vmatprep.mubr.msk.bf16.mxu1 %vm2266_vm0, %v2265_v0 }
 0x48f   : > { %v1906_v55 = vpop.eup %1905  ;;  %1759 = vmatprep.subr.bf16.mxu1 %v2265_v0 }
 0x490   : > { %v1154_v56 = vmul.f32 %v1906_v55, %v1898_v34 }
 0x492   : > { %1635 = vst.msk [vmem:[%s2768_s29 + $0x18] sm:$0xff] %vm759_vm2, %v1154_v56  ;;  %v1157_v57 = vpack.c.bf16 %v1154_v56, %v1154_v56 }
 0x495   : > { %1748 = vmatmul.mubr.msk.bf16.vlgmr.msra.gmra.mrb[20].mxu1 %vm759_vm2, %v1157_v57 }
 0x496   : > { %1763 = vmatprep.mubr.msk.bf16.mxu1 %vm2266_vm0, %v2265_v0 }
 0x497   : > { %1760 = vmatpush3.bf16.xpose.msra.mxu1 %v1286_v6 }
 0x498   : > { %1761 = vmatprep.subr.bf16.mxu1 %v2265_v0 }
 0x49f   : > { %1762 = vmatpush3.bf16.xpose.msra.mxu1 %v1289_v13 }
 0x4a6   : > { %1764 = vmatmul.mubr.msk.bf16.vlgmr.msra.gmra.mrb[24].mxu1 %vm593_vm1, %v2704_v20 }
 0x4e5   : > { %v861_v58 = vpop.f32.mrb[8].mxu1 }
 0x4e6   : > { %v1713_v59 = vpop.f32.mrb[9].mxu1 }
 0x4e7   : > { %v864_v60 = vpop.f32.mrb[10].mxu1 }
 0x4e8   : > { %v1714_v61 = vpop.f32.mrb[11].mxu1 }
 0x557   : > { %v976_v14 = vpop.f32.mrb[12].mxu1 }
 0x558   : > { %1207 = vrot.lane.b32.xlu1 %v976_v14, %s2270_s24  ;;  %v1725_v16 = vpop.f32.mrb[13].mxu1 }
 0x559   : > { %v979_v17 = vpop.f32.mrb[14].mxu1 }
 0x55a   : > { %v1726_v19 = vpop.f32.mrb[15].mxu1 }
 0x560   : > { %v1088_v0 = vpop.f32.mrb[16].mxu1 }
 0x561   : > { %1211 = vrot.lane.b32.xlu0 %v1088_v0, %s2271_s18  ;;  %v1737_v21 = vpop.f32.mrb[17].mxu1 }
 0x562   : > { %v1091_v22 = vpop.f32.mrb[18].mxu1 }
 0x563   : > { %v1738_v23 = vpop.f32.mrb[19].mxu1 }
 0x568   : > { %v1200_v24 = vpop.f32.mrb[20].mxu1 }
 0x569   : > { %1215 = vrot.lane.b32.xlu1 %v1200_v24, %s2272_s3  ;;  %v1749_v25 = vpop.f32.mrb[21].mxu1 }
 0x56a   : > { %v1203_v26 = vpop.f32.mrb[22].mxu1 }
 0x56b   : > { %v1750_v27 = vpop.f32.mrb[23].mxu1 }
 0x579   : > { %v1325_v34 = vpop.f32.mrb[24].mxu1 }
 0x57a   : > { %v1765_v35 = vpop.f32.mrb[25].mxu1 }
 0x57b   : > { %v1328_v36 = vpop.f32.mrb[26].mxu1 }
 0x57c   : > { %v1766_v37 = vpop.f32.mrb[27].mxu1 }
 0x5ca   : > { %v1208_v28 = vpop.permute.xlu1 %1207 }
 0x5cb   : > { %v1218_v30 = vsel %vm759_vm2, %v861_v58, %v1208_v28 }
 0x5d3   : > { %v1212_v29 = vpop.permute.xlu0 %1211 }
 0x5d4   : > { %v1220_v31 = vsel %vm1219_vm4, %v1218_v30, %v1212_v29 }
 0x5db   : > { %v1216_v32 = vpop.permute.xlu1 %1215 }
 0x5dc   : > { %v1222_v20 = vsel %vm1221_vm5, %v1220_v31, %v1216_v32 }
 0x5dd   : > { %v1233_v33 = vpack.c.bf16 %v1222_v20, %v1222_v20 }
 0x5df   : > { %1756 = vmatmul.mubr.msk.bf16.vlgmr.msra.gmra.mrb[20].mxu0 %vm593_vm1, %v1233_v33 }
 0x6b2   : > { %v1279_v38 = vpop.f32.mrb[20].mxu0 }
 0x6b3   : > { %v1326_v40 = vadd.f32 %v1325_v34, %v1279_v38  ;;  %v1757_v41 = vpop.f32.mrb[21].mxu0 }
 0x6b4   : > { %v1282_v42 = vpop.f32.mrb[22].mxu0 }
 0x6b5   : > { %v1338_v43 = vadd.f32 %v1639_v39, %v1326_v40  ;;  %v1758_v44 = vpop.f32.mrb[23].mxu0 }
 0x6b7   : > { %v1339_v45 = vadd.f32 %v1338_v43, %v2698_v18 }
 0x6b9   : > { %v1340_v46 = vsel %vm593_vm1, %v1339_v45, 0.0 }
 0x6ba   : > { %1341 = vadd.xlane.f32.xlu0 %v1340_v46 }
 0x747   : > { %v1342_v47 = vpop.xlane.xlu0 %1341 }
 0x748   : > { %v1344_v48 = vmul.f32 0.03125, %v1342_v47 }
 0x74a   : > { %v1345_v49 = vsub.f32 %v1339_v45, %v1344_v48 }
 0x74c   : > { %v1346_v50 = vmul.f32 %v1345_v49, %v1345_v49 }
 0x74e   : > { %v1347_v51 = vsel %vm593_vm1, %v1346_v50, 0.0 }
 0x74f   : > { %1348 = vadd.xlane.f32.xlu1 %v1347_v51 }
 0x750   : > { %2152 = shalt.err (!%p2149_p1)
}
 0x751   : > { %s2153_s8 = scalar_lea.hbm %s2819_s10, 512  ;;  %s2157_s18 = scalar_lea.hbm %s2992_s5, 1024 }
 0x752   : > { %p2154_p13 = scmp.ne.s32.totalorder %s2819_s10, %s2153_s8  ;;  %p2158_p7 = scmp.lt.u32.totalorder %s2819_s10, %s2992_s5 }
 0x753   : > { %p2159_p9 = scmp.lt.u32.totalorder %s2157_s18, %s2153_s8  ;;  %p2161_p11 = scmp.lt.u32.totalorder %s2153_s8, %s2819_s10 }
 0x754   : > { %p2155_p12 = pnand %p2154_p13, %p2993_p6 }
 0x755   : > { %p2160_p3 = por %p2159_p9, %p2158_p7 }
 0x756   : > { %p2156_p0 = pneg %p2155_p12 }
 0x757   : > { %p2162_p8 = por %p2161_p11, %p2160_p3 }
 0x759   : > { %p2163_p5 = pnand %p2162_p8, %p2156_p0 }
 0x75b   : > { %2166 = shalt.err (!%p2163_p5)
}
 0x75c   : > { %s2274_s30 = smov 128   ;;  %s2275_s21 = smov 256  }
 0x75d   : > { %1794 = dma.vmem_to_hbm [thread:$0]  (%p2993_p6), %s2822_s28, 512, %s2819_s10, %s1377_s17, %s2274_s30, %s2275_s21, %s2270_s24  }
 0x75e   : > { %s2994_s26 = sld [smem:[#allocation37_spill]]  ;;  %s2995_s19 = sld [smem:[#allocation38_spill]] }
 0x75f   : > { %s576_s8 = scalar_lea.vmem [#allocation16], %s2655_s15  ;;  %s2996_s28 = sld [smem:[#allocation39_spill]] }
 0x760   : > { %s1390_s13 = sshll.u32 %s576_s8, 4  ;;  %s1372_s29 = scalar_lea.sflag [#allocation4], %s2652_s14  ;;  %s2863_s13 = int_to_ptr.vmem [resolvable:$true] %s1390_s13 }
 0x761   : > { %s2167_s18 = scalar_lea.vmem %s2863_s13, 128  ;;  %s2276_s15 = smov [#allocation16]  }
 0x762   : > { %p2168_p2 = scmp.ne.s32.totalorder %s2863_s13, %s2167_s18  ;;  %s2171_s16 = sshll.u32 %s2276_s15, 4  ;;  %s2172_s16 = int_to_ptr.vmem [resolvable:$false] %s2171_s16 }
 0x763   : > { %s2173_s3 = scalar_lea.vmem %s2172_s16, 256  ;;  %p2174_p1 = scmp.lt.s32.totalorder %s2863_s13, %s2172_s16 }
 0x764   : > { %v1640_v55 = vld [vmem:[%s2994_s26] ss:$0 sm:$0xff]  ;;  %p2169_p4 = pnand %p2168_p2, %p2993_p6  ;;  %p2175_p13 = scmp.lt.s32.totalorder %s2173_s3, %s2167_s18 }
 0x765   : > { %v1641_v57 = vld [vmem:[%s2995_s19] ss:$0 sm:$0xff]  ;;  %s2861_s17 = scalar_lea.hbm %s2996_s28, %s1644_s12 }
 0x766   : > { %p2170_p10 = pneg %p2169_p4  ;;  %p2176_p12 = por %p2175_p13, %p2174_p1 }
 0x768   : > { %p2177_p0 = pnand %p2176_p12, %p2170_p10 }
 0x7dc   : > { %v1349_v18 = vpop.xlane.xlu1 %1348 }
 0x7dd   : > { %v1350_v52 = vmul.f32 0.03125, %v1349_v18 }
 0x7df   : > { %v1351_v53 = vadd.f32 1e-05, %v1350_v52 }
 0x7e1   : > { %1907 = vrsqrt.f32 %v1351_v53 }
 0x7eb   : > { %v1908_v54 = vpop.eup %1907 }
 0x7ec   : > { %v1353_v56 = vmul.f32 %v1908_v54, %v1345_v49 }
 0x7ee   : > { %v1361_v58 = vmul.f32 %v1640_v55, %v1353_v56 }
 0x7f0   : > { %v1369_v59 = vadd.f32 %v1641_v57, %v1361_v58 }
 0x7f2   : > { %1370 = vst.msk [vmem:[%s576_s8] sm:$0xff] %vm593_vm1, %v1369_v59 }
 0x7f3   : > { %2180 = shalt.err (!%p2177_p0)
}
 0x7f4   : > { %s2181_s14 = scalar_lea.hbm %s2861_s17, 128  ;;  %s2185_s30 = scalar_lea.hbm %s2996_s28, 256 }
 0x7f5   : > { %p2182_p7 = scmp.ne.s32.totalorder %s2861_s17, %s2181_s14  ;;  %p2186_p11 = scmp.lt.u32.totalorder %s2861_s17, %s2996_s28 }
 0x7f6   : > { %p2187_p8 = scmp.lt.u32.totalorder %s2185_s30, %s2181_s14  ;;  %p2189_p2 = scmp.lt.u32.totalorder %s2181_s14, %s2861_s17 }
 0x7f7   : > { %p2183_p9 = pnand %p2182_p7, %p2993_p6 }
 0x7f8   : > { %p2188_p5 = por %p2187_p8, %p2186_p11 }
 0x7f9   : > { %p2184_p3 = pneg %p2183_p9 }
 0x7fa   : > { %p2190_p4 = por %p2189_p2, %p2188_p5 }
 0x7fc   : > { %p2191_p10 = pnand %p2190_p4, %p2184_p3 }
 0x7fe   : > { %2194 = shalt.err (!%p2191_p10)
}
 0x7ff   : > { %1793 = dma.vmem_to_hbm [thread:$0]  (%p2993_p6), %s2863_s13, 128, %s2861_s17, %s1372_s29  }
 0x800 PF: > { %s2997_s1 = sld [smem:[#allocation26_spill]]  ;;  %s2998_s26 = sld [smem:[#allocation32_spill]] }
 0x801   : > { %s2999_s20 = sld [smem:[#allocation27_spill]] }
 0x806   : > { %s1417_s25 = sand.u32 1, %s2997_s1   ;;  %p3000_p1 = scmp.ne.s32.totalorder %s2998_s26, 0 }
 0x807   : > { %p3001_p13 = scmp.ge.s32.totalorder %s2999_s20, 2  ;;  %s1418_s19 = scalar_lea.sflag [#allocation4], %s1417_s25 }
 0x809   : > { %p1824_p12 = pnand %p3001_p13, %p3000_p1 }
 0x80b   : > { %2232 = dma.done.wait (!%p1824_p12), %s1418_s19, 128  }
 0x80c   : > { %2234 = vsyncadd (!%p1824_p12), %s1418_s19, 4294967168  ;;  %s1427_s8 = scalar_lea.sflag [#allocation18], %s1417_s25 }
 0x80d   : > { %2236 = dma.done.wait (!%p1824_p12), %s1427_s8, 512  }
 0x80e   : > { %2238 = vsyncadd (!%p1824_p12), %s1427_s8, 4294966784  ;;  %s3002_s24 = sld [smem:[#allocation29_spill]]  ;;  %s3003_s9 = sld [smem:[#allocation30_spill]] }
 0x80f   : > { %s3004_s21 = smov %s2245_s22  ;;  %s3005_s22 = smov %s2249_s23 }
 0x814   : > { %p35_p6 = scmp.ge.s32.totalorder %s3002_s24, 4   ;;  %s3006_s23 = smov %s3003_s9 }
 0x816   :  { %37 = sbr.rel (!%p35_p6) target bundleno = 21 (0x15), region = 173 }
 0x81d   :  { %1432 = vsyncpa [#allocation3], 1 }
 0x81e   :  { %1434 = vsyncpa [#allocation3 + $0x1], 1 }
 0x81f   :  { %1435 = vsyncpa [#allocation6], 1 }
 0x820   :  { %1437 = vsyncpa [#allocation6 + $0x1], 1 }
 0x821   :  { %1438 = vsyncpa [#allocation9], 1 }
 0x822   :  { %1439 = vsyncpa [#allocation12], 1 }
 0x823   :  { %1440 = vsyncpa [#allocation15], 1 }
 0x824   :  { %1441 = vsyncpa [#allocation4], 1 }
 0x825   :  { %1443 = vsyncpa [#allocation4 + $0x1], 1 }
 0x826   :  { %1444 = vsyncpa [#allocation18], 1 }
 0x827   :  { %1446 = vsyncpa [#allocation18 + $0x1], 1 }

</bundles_post_ra>
